<compile_context>
chip_gen: v7x
topology: tpu7x:2x2x1
jax: 0.10.0
libtpu: 0.0.40
codegen_flags: <defaults>
</compile_context>

<pallas_src>
import jax
import jax.numpy as jnp
from jax import lax
from jax.experimental import pallas as pl
from jax.experimental.pallas import tpu as pltpu


def lstm_linear_kernel(x_ref, wih_ref, whh_ref, b_ref, lw_ref, lb_ref,
                       out_ref, xproj_ref):
    """LSTM recurrence over time + final linear projection.

    x_ref    : (S*B, IP)   bf16  time-major flattened, lane-padded inputs
    wih_ref  : (IP, 4*HP)  bf16  gate-padded input weights
    whh_ref  : (HP, 4*HP)  bf16  gate-padded recurrent weights
    b_ref    : (1, 4*HP)   f32   gate-padded bias
    lw_ref   : (1, HP)     f32   final linear weight (row, padded)
    lb_ref   : (1, 1)      f32   final linear bias
    out_ref  : (B, 1)      f32
    xproj_ref: (S*B, 4*HP) f32   VMEM scratch for hoisted input projection
    """
    B = out_ref.shape[0]
    SB = x_ref.shape[0]
    S = SB // B
    HP = whh_ref.shape[0]

    # Step-0 slice of the input projection first (small (B,IP)@(IP,4*HP) dot)
    # so the first recurrence step is not ordered behind the full 64-row
    # projection drain + VMEM store.
    xproj_ref[0:B, :] = (
        jnp.dot(x_ref[0:B, :], wih_ref[...], preferred_element_type=jnp.float32)
        + b_ref[...]
    )
    # Remaining timesteps' projection; its drain/store overlaps the EUP/VPU
    # phases of the early recurrence steps.
    xproj_ref[B:SB, :] = (
        jnp.dot(x_ref[B:SB, :], wih_ref[...], preferred_element_type=jnp.float32)
        + b_ref[...]
    )

    h = jnp.zeros((B, HP), jnp.float32)
    c = jnp.zeros((B, HP), jnp.float32)

    def sigmoid_t(x):
        # sigmoid(x) == 0.5 * tanh(0.5 * x) + 0.5 : one EUP push per gate.
        return 0.5 * jnp.tanh(0.5 * x) + 0.5

    # S is tiny and static -> fully unrolled loop (LLO scheduler visibility).
    for t in range(S):
        base = t * B
        h_b = h.astype(jnp.bfloat16)
        # Per-gate recurrent matmuls, slicing whh_ref inside the loop (the
        # full (128,512) bf16 weight is never held register-resident).  Each
        # gate's activation can begin as soon as its 128-lane tile drains.
        gi = xproj_ref[base:base + B, 0 * HP:1 * HP] + jnp.dot(
            h_b, whh_ref[:, 0 * HP:1 * HP], preferred_element_type=jnp.float32)
        gf = xproj_ref[base:base + B, 1 * HP:2 * HP] + jnp.dot(
            h_b, whh_ref[:, 1 * HP:2 * HP], preferred_element_type=jnp.float32)
        gg = xproj_ref[base:base + B, 2 * HP:3 * HP] + jnp.dot(
            h_b, whh_ref[:, 2 * HP:3 * HP], preferred_element_type=jnp.float32)
        go = xproj_ref[base:base + B, 3 * HP:4 * HP] + jnp.dot(
            h_b, whh_ref[:, 3 * HP:4 * HP], preferred_element_type=jnp.float32)

        i_t = sigmoid_t(gi)
        f_t = sigmoid_t(gf)
        g_t = jnp.tanh(gg)
        o_t = sigmoid_t(go)
        # All gate elementwise math stays f32 (v5e VPU/EUP have no bf16 path).
        c = f_t * c + i_t * g_t
        h = o_t * jnp.tanh(c)

    # Final Linear(50 -> 1): VPU multiply + lane reduction (skip N=1 MXU matmul).
    out_ref[...] = jnp.sum(h * lw_ref[...], axis=-1, keepdims=True) + lb_ref[...]


def nn_forward(x_bsf, w_ih, w_hh, bias, lin_w, lin_b):
    """x_bsf: (batch, seq, in_features) like the PyTorch module."""
    B, S, I = x_bsf.shape
    H = w_hh.shape[0]
    IP = 128   # lane-pad input features 25 -> 128
    HP = 128   # lane-pad hidden 50 -> 128 so each gate = one 128-lane block

    # Time-major, flattened, lane-padded input (S*B, IP).
    x_flat = jnp.transpose(x_bsf, (1, 0, 2)).reshape(S * B, I).astype(jnp.float32)
    x_pad = jnp.zeros((S * B, IP), jnp.float32).at[:, :I].set(x_flat)

    def pad_gate_cols(w, rows_out):
        """(rows_in, 4H) -> (rows_out, 4HP); gate k lives at cols [k*HP, k*HP+H)."""
        rows_in = w.shape[0]
        out = jnp.zeros((rows_out, 4 * HP), jnp.float32)
        for k in range(4):
            out = out.at[:rows_in, k * HP:k * HP + H].set(w[:, k * H:(k + 1) * H])
        return out

    wih_p = pad_gate_cols(w_ih.astype(jnp.float32), IP)    # (IP, 4*HP)
    whh_p = pad_gate_cols(w_hh.astype(jnp.float32), HP)    # (HP, 4*HP)

    bias_p = jnp.zeros((1, 4 * HP), jnp.float32)
    for k in range(4):
        bias_p = bias_p.at[0, k * HP:k * HP + H].set(
            bias[k * H:(k + 1) * H].astype(jnp.float32))

    lw_p = jnp.zeros((1, HP), jnp.float32).at[0, :H].set(
        lin_w[:, 0].astype(jnp.float32))
    lb_p = lin_b.reshape(1, 1).astype(jnp.float32)

    vmem = pl.BlockSpec(memory_space=pltpu.MemorySpace.VMEM)
    out = pl.pallas_call(
        lstm_linear_kernel,
        out_shape=jax.ShapeDtypeStruct((B, 1), jnp.float32),
        in_specs=[vmem] * 6,
        out_specs=vmem,
        scratch_shapes=[pltpu.VMEM((S * B, 4 * HP), jnp.float32)],
    )(
        x_pad.astype(jnp.bfloat16),
        wih_p.astype(jnp.bfloat16),
        whh_p.astype(jnp.bfloat16),
        bias_p, lw_p, lb_p,
    )
    return out


def reference_forward_f32(x_bsf, w_ih, w_hh, bias, lin_w, lin_b):
    """Pure-f32 JAX reference (same math as the PyTorch module)."""
    B, S, I = x_bsf.shape
    H = w_hh.shape[0]

    def step(carry, x_t):
        h, c = carry
        gates = x_t @ w_ih + h @ w_hh + bias
        i_t = jax.nn.sigmoid(gates[:, :H])
        f_t = jax.nn.sigmoid(gates[:, H:2 * H])
        g_t = jnp.tanh(gates[:, 2 * H:3 * H])
        o_t = jax.nn.sigmoid(gates[:, 3 * H:])
        c = f_t * c + i_t * g_t
        h = o_t * jnp.tanh(c)
        return (h, c), None

    x_sbf = jnp.transpose(x_bsf, (1, 0, 2))
    (h, _), _ = lax.scan(step, (jnp.zeros((B, H)), jnp.zeros((B, H))), x_sbf)
    return h @ lin_w + lin_b.reshape(1, 1)


def reference_forward_matched(x_bsf, w_ih, w_hh, bias, lin_w, lin_b):
    """Reference with the same bf16-at-matmul-boundary precision as the kernel."""
    B, S, I = x_bsf.shape
    H = w_hh.shape[0]
    x_sbf = jnp.transpose(x_bsf, (1, 0, 2)).astype(jnp.bfloat16)
    wih_b = w_ih.astype(jnp.bfloat16)
    whh_b = w_hh.astype(jnp.bfloat16)
    x_proj = (jnp.einsum("sbi,ig->sbg", x_sbf, wih_b,
                         preferred_element_type=jnp.float32)
              + bias.astype(jnp.float32))

    def step(carry, xp_t):
        h, c = carry
        gates = xp_t + jnp.dot(h.astype(jnp.bfloat16), whh_b,
                               preferred_element_type=jnp.float32)
        i_t = jax.nn.sigmoid(gates[:, :H])
        f_t = jax.nn.sigmoid(gates[:, H:2 * H])
        g_t = jnp.tanh(gates[:, 2 * H:3 * H])
        o_t = jax.nn.sigmoid(gates[:, 3 * H:])
        c = f_t * c + i_t * g_t
        h = o_t * jnp.tanh(c)
        return (h, c), None

    (h, _), _ = lax.scan(step, (jnp.zeros((B, H), jnp.float32),
                                jnp.zeros((B, H), jnp.float32)), x_proj)
    return h @ lin_w.astype(jnp.float32) + lin_b.reshape(1, 1)


def make_params(key, in_features=25, hidden=50, posterior_rho_init=-3.0):
    """Deterministic Bayesian weight sampling: w = mu + log1p(exp(rho)) * eps."""
    # TODO(synk): blitz BayesianLSTM draws fresh epsilon per forward; sampled
    # once here (deterministic PRNGKey) since sampling is elementwise glue.
    ks = jax.random.split(key, 8)

    def sample(mu_key, eps_key, shape):
        mu = 0.1 * jax.random.normal(mu_key, shape, jnp.float32)
        rho = jnp.full(shape, posterior_rho_init, jnp.float32)
        eps = jax.random.normal(eps_key, shape, jnp.float32)
        return mu + jnp.log1p(jnp.exp(rho)) * eps

    w_ih = sample(ks[0], ks[1], (in_features, 4 * hidden))
    w_hh = sample(ks[2], ks[3], (hidden, 4 * hidden))
    bias = sample(ks[4], ks[5], (4 * hidden,))
    bound = 1.0 / jnp.sqrt(jnp.float32(hidden))
    lin_w = jax.random.uniform(ks[6], (hidden, 1), jnp.float32, -bound, bound)
    lin_b = jax.random.uniform(ks[7], (1,), jnp.float32, -bound, bound)
    return w_ih, w_hh, bias, lin_w, lin_b


if __name__ == "__main__":
    key = jax.random.PRNGKey(0)
    k_x, k_p = jax.random.split(key)

    batch, seq, in_features, hidden = 8, 8, 25, 50
    x = jax.random.normal(k_x, (batch, seq, in_features), jnp.float32)
    w_ih, w_hh, bias, lin_w, lin_b = make_params(k_p, in_features, hidden)

    out = nn_forward(x, w_ih, w_hh, bias, lin_w, lin_b)
    out = jax.block_until_ready(out)
    assert out.shape == (batch, 1)

    ref_matched = reference_forward_matched(x, w_ih, w_hh, bias, lin_w, lin_b)
    ref_f32 = reference_forward_f32(x, w_ih, w_hh, bias, lin_w, lin_b)

    assert jnp.allclose(out, ref_matched, atol=2e-3, rtol=2e-3), \
        "mismatch vs matched-precision reference"
    assert jnp.allclose(out, ref_f32, atol=5e-2, rtol=5e-2), \
        "mismatch vs f32 reference"

    print("KERNEL_OK")
</pallas_src>

<mosaic_0001>
module attributes {stable_mosaic.version = 11 : i64} {
  func.func @lstm_linear_kernel(%arg0: memref<64x128xbf16, #tpu.memory_space<vmem>>, %arg1: memref<128x512xbf16, #tpu.memory_space<vmem>>, %arg2: memref<128x512xbf16, #tpu.memory_space<vmem>>, %arg3: memref<1x512xf32, #tpu.memory_space<vmem>>, %arg4: memref<1x128xf32, #tpu.memory_space<vmem>>, %arg5: memref<1x1xf32, #tpu.memory_space<vmem>>, %arg6: memref<8x1xf32, #tpu.memory_space<vmem>>, %arg7: memref<64x512xf32, #tpu.memory_space<vmem>>) attributes {dimension_semantics = [], scalar_prefetch = 0 : i64, scratch_operands = 1 : i64, tpu.core_type = #tpu.core_type<tc>} {
    %c0 = arith.constant 0 : index
    %c0_0 = arith.constant 0 : index
    %0 = vector.load %arg0[%c0, %c0_0] : memref<64x128xbf16, #tpu.memory_space<vmem>>, vector<8x128xbf16>
    %c0_1 = arith.constant 0 : index
    %c0_2 = arith.constant 0 : index
    %1 = vector.load %arg1[%c0_1, %c0_2] : memref<128x512xbf16, #tpu.memory_space<vmem>>, vector<128x512xbf16>
    %cst = arith.constant dense<0.000000e+00> : vector<8x512xf32>
    %2 = tpu.matmul %0, %1, %cst {dimension_numbers = #tpu.dot_dimension_numbers<[1], [0], [0], [1], [0, 0, 1, 1], [], []>} : vector<8x128xbf16>, vector<128x512xbf16>, vector<8x512xf32> -> vector<8x512xf32>
    %c0_3 = arith.constant 0 : index
    %c0_4 = arith.constant 0 : index
    %3 = vector.load %arg3[%c0_3, %c0_4] : memref<1x512xf32, #tpu.memory_space<vmem>>, vector<1x512xf32>
    %4 = vector.broadcast %3 : vector<1x512xf32> to vector<8x512xf32>
    %5 = arith.addf %2, %4 : vector<8x512xf32>
    %c0_5 = arith.constant 0 : index
    %c0_6 = arith.constant 0 : index
    %6 = vector.load %arg7[%c0_5, %c0_6] : memref<64x512xf32, #tpu.memory_space<vmem>>, vector<8x512xf32>
    tpu.vector_store %arg7[%c0_5, %c0_6], %5 {strides = array<i32>} : memref<64x512xf32, #tpu.memory_space<vmem>>, vector<8x512xf32>,
    %c8 = arith.constant 8 : index
    %c0_7 = arith.constant 0 : index
    %7 = vector.load %arg0[%c8, %c0_7] : memref<64x128xbf16, #tpu.memory_space<vmem>>, vector<56x128xbf16>
    %c0_8 = arith.constant 0 : index
    %c0_9 = arith.constant 0 : index
    %8 = vector.load %arg1[%c0_8, %c0_9] : memref<128x512xbf16, #tpu.memory_space<vmem>>, vector<128x512xbf16>
    %cst_10 = arith.constant dense<0.000000e+00> : vector<56x512xf32>
    %9 = tpu.matmul %7, %8, %cst_10 {dimension_numbers = #tpu.dot_dimension_numbers<[1], [0], [0], [1], [0, 0, 1, 1], [], []>} : vector<56x128xbf16>, vector<128x512xbf16>, vector<56x512xf32> -> vector<56x512xf32>
    %c0_11 = arith.constant 0 : index
    %c0_12 = arith.constant 0 : index
    %10 = vector.load %arg3[%c0_11, %c0_12] : memref<1x512xf32, #tpu.memory_space<vmem>>, vector<1x512xf32>
    %11 = vector.broadcast %10 : vector<1x512xf32> to vector<56x512xf32>
    %12 = arith.addf %9, %11 : vector<56x512xf32>
    %c8_13 = arith.constant 8 : index
    %c0_14 = arith.constant 0 : index
    %13 = vector.load %arg7[%c8_13, %c0_14] : memref<64x512xf32, #tpu.memory_space<vmem>>, vector<56x512xf32>
    tpu.vector_store %arg7[%c8_13, %c0_14], %12 {strides = array<i32>} : memref<64x512xf32, #tpu.memory_space<vmem>>, vector<56x512xf32>,
    %cst_15 = arith.constant 0.000000e+00 : f32
    %14 = vector.broadcast %cst_15 : f32 to vector<8x128xf32>
    %cst_16 = arith.constant 0.000000e+00 : f32
    %15 = vector.broadcast %cst_16 : f32 to vector<8x128xf32>
    %16 = arith.truncf %14 : vector<8x128xf32> to vector<8x128xbf16>
    %c0_17 = arith.constant 0 : index
    %c0_18 = arith.constant 0 : index
    %17 = vector.load %arg7[%c0_17, %c0_18] : memref<64x512xf32, #tpu.memory_space<vmem>>, vector<8x128xf32>
    %c0_19 = arith.constant 0 : index
    %c0_20 = arith.constant 0 : index
    %18 = vector.load %arg2[%c0_19, %c0_20] : memref<128x512xbf16, #tpu.memory_space<vmem>>, vector<128x128xbf16>
    %cst_21 = arith.constant dense<0.000000e+00> : vector<8x128xf32>
    %19 = tpu.matmul %16, %18, %cst_21 {dimension_numbers = #tpu.dot_dimension_numbers<[1], [0], [0], [1], [0, 0, 1, 1], [], []>} : vector<8x128xbf16>, vector<128x128xbf16>, vector<8x128xf32> -> vector<8x128xf32>
    %20 = arith.addf %17, %19 : vector<8x128xf32>
    %c0_22 = arith.constant 0 : index
    %c128 = arith.constant 128 : index
    %21 = vector.load %arg7[%c0_22, %c128] : memref<64x512xf32, #tpu.memory_space<vmem>>, vector<8x128xf32>
    %c0_23 = arith.constant 0 : index
    %c128_24 = arith.constant 128 : index
    %22 = vector.load %arg2[%c0_23, %c128_24] : memref<128x512xbf16, #tpu.memory_space<vmem>>, vector<128x128xbf16>
    %cst_25 = arith.constant dense<0.000000e+00> : vector<8x128xf32>
    %23 = tpu.matmul %16, %22, %cst_25 {dimension_numbers = #tpu.dot_dimension_numbers<[1], [0], [0], [1], [0, 0, 1, 1], [], []>} : vector<8x128xbf16>, vector<128x128xbf16>, vector<8x128xf32> -> vector<8x128xf32>
    %24 = arith.addf %21, %23 : vector<8x128xf32>
    %c0_26 = arith.constant 0 : index
    %c256 = arith.constant 256 : index
    %25 = vector.load %arg7[%c0_26, %c256] : memref<64x512xf32, #tpu.memory_space<vmem>>, vector<8x128xf32>
    %c0_27 = arith.constant 0 : index
    %c256_28 = arith.constant 256 : index
    %26 = vector.load %arg2[%c0_27, %c256_28] : memref<128x512xbf16, #tpu.memory_space<vmem>>, vector<128x128xbf16>
    %cst_29 = arith.constant dense<0.000000e+00> : vector<8x128xf32>
    %27 = tpu.matmul %16, %26, %cst_29 {dimension_numbers = #tpu.dot_dimension_numbers<[1], [0], [0], [1], [0, 0, 1, 1], [], []>} : vector<8x128xbf16>, vector<128x128xbf16>, vector<8x128xf32> -> vector<8x128xf32>
    %28 = arith.addf %25, %27 : vector<8x128xf32>
    %c0_30 = arith.constant 0 : index
    %c384 = arith.constant 384 : index
    %29 = vector.load %arg7[%c0_30, %c384] : memref<64x512xf32, #tpu.memory_space<vmem>>, vector<8x128xf32>
    %c0_31 = arith.constant 0 : index
    %c384_32 = arith.constant 384 : index
    %30 = vector.load %arg2[%c0_31, %c384_32] : memref<128x512xbf16, #tpu.memory_space<vmem>>, vector<128x128xbf16>
    %cst_33 = arith.constant dense<0.000000e+00> : vector<8x128xf32>
    %31 = tpu.matmul %16, %30, %cst_33 {dimension_numbers = #tpu.dot_dimension_numbers<[1], [0], [0], [1], [0, 0, 1, 1], [], []>} : vector<8x128xbf16>, vector<128x128xbf16>, vector<8x128xf32> -> vector<8x128xf32>
    %32 = arith.addf %29, %31 : vector<8x128xf32>
    %cst_34 = arith.constant 5.000000e-01 : f32
    %33 = vector.broadcast %cst_34 : f32 to vector<8x128xf32>
    %34 = arith.mulf %33, %20 : vector<8x128xf32>
    %35 = math.tanh %34 : vector<8x128xf32>
    %cst_35 = arith.constant 5.000000e-01 : f32
    %36 = vector.broadcast %cst_35 : f32 to vector<8x128xf32>
    %37 = arith.mulf %36, %35 : vector<8x128xf32>
    %cst_36 = arith.constant 5.000000e-01 : f32
    %38 = vector.broadcast %cst_36 : f32 to vector<8x128xf32>
    %39 = arith.addf %37, %38 : vector<8x128xf32>
    %cst_37 = arith.constant 5.000000e-01 : f32
    %40 = vector.broadcast %cst_37 : f32 to vector<8x128xf32>
    %41 = arith.mulf %40, %24 : vector<8x128xf32>
    %42 = math.tanh %41 : vector<8x128xf32>
    %cst_38 = arith.constant 5.000000e-01 : f32
    %43 = vector.broadcast %cst_38 : f32 to vector<8x128xf32>
    %44 = arith.mulf %43, %42 : vector<8x128xf32>
    %cst_39 = arith.constant 5.000000e-01 : f32
    %45 = vector.broadcast %cst_39 : f32 to vector<8x128xf32>
    %46 = arith.addf %44, %45 : vector<8x128xf32>
    %47 = math.tanh %28 : vector<8x128xf32>
    %cst_40 = arith.constant 5.000000e-01 : f32
    %48 = vector.broadcast %cst_40 : f32 to vector<8x128xf32>
    %49 = arith.mulf %48, %32 : vector<8x128xf32>
    %50 = math.tanh %49 : vector<8x128xf32>
    %cst_41 = arith.constant 5.000000e-01 : f32
    %51 = vector.broadcast %cst_41 : f32 to vector<8x128xf32>
    %52 = arith.mulf %51, %50 : vector<8x128xf32>
    %cst_42 = arith.constant 5.000000e-01 : f32
    %53 = vector.broadcast %cst_42 : f32 to vector<8x128xf32>
    %54 = arith.addf %52, %53 : vector<8x128xf32>
    %55 = arith.mulf %46, %15 : vector<8x128xf32>
    %56 = arith.mulf %39, %47 : vector<8x128xf32>
    %57 = arith.addf %55, %56 : vector<8x128xf32>
    %58 = math.tanh %57 : vector<8x128xf32>
    %59 = arith.mulf %54, %58 : vector<8x128xf32>
    %60 = arith.truncf %59 : vector<8x128xf32> to vector<8x128xbf16>
    %c8_43 = arith.constant 8 : index
    %c0_44 = arith.constant 0 : index
    %61 = vector.load %arg7[%c8_43, %c0_44] : memref<64x512xf32, #tpu.memory_space<vmem>>, vector<8x128xf32>
    %c0_45 = arith.constant 0 : index
    %c0_46 = arith.constant 0 : index
    %62 = vector.load %arg2[%c0_45, %c0_46] : memref<128x512xbf16, #tpu.memory_space<vmem>>, vector<128x128xbf16>
    %cst_47 = arith.constant dense<0.000000e+00> : vector<8x128xf32>
    %63 = tpu.matmul %60, %62, %cst_47 {dimension_numbers = #tpu.dot_dimension_numbers<[1], [0], [0], [1], [0, 0, 1, 1], [], []>} : vector<8x128xbf16>, vector<128x128xbf16>, vector<8x128xf32> -> vector<8x128xf32>
    %64 = arith.addf %61, %63 : vector<8x128xf32>
    %c8_48 = arith.constant 8 : index
    %c128_49 = arith.constant 128 : index
    %65 = vector.load %arg7[%c8_48, %c128_49] : memref<64x512xf32, #tpu.memory_space<vmem>>, vector<8x128xf32>
    %c0_50 = arith.constant 0 : index
    %c128_51 = arith.constant 128 : index
    %66 = vector.load %arg2[%c0_50, %c128_51] : memref<128x512xbf16, #tpu.memory_space<vmem>>, vector<128x128xbf16>
    %cst_52 = arith.constant dense<0.000000e+00> : vector<8x128xf32>
    %67 = tpu.matmul %60, %66, %cst_52 {dimension_numbers = #tpu.dot_dimension_numbers<[1], [0], [0], [1], [0, 0, 1, 1], [], []>} : vector<8x128xbf16>, vector<128x128xbf16>, vector<8x128xf32> -> vector<8x128xf32>
    %68 = arith.addf %65, %67 : vector<8x128xf32>
    %c8_53 = arith.constant 8 : index
    %c256_54 = arith.constant 256 : index
    %69 = vector.load %arg7[%c8_53, %c256_54] : memref<64x512xf32, #tpu.memory_space<vmem>>, vector<8x128xf32>
    %c0_55 = arith.constant 0 : index
    %c256_56 = arith.constant 256 : index
    %70 = vector.load %arg2[%c0_55, %c256_56] : memref<128x512xbf16, #tpu.memory_space<vmem>>, vector<128x128xbf16>
    %cst_57 = arith.constant dense<0.000000e+00> : vector<8x128xf32>
    %71 = tpu.matmul %60, %70, %cst_57 {dimension_numbers = #tpu.dot_dimension_numbers<[1], [0], [0], [1], [0, 0, 1, 1], [], []>} : vector<8x128xbf16>, vector<128x128xbf16>, vector<8x128xf32> -> vector<8x128xf32>
    %72 = arith.addf %69, %71 : vector<8x128xf32>
    %c8_58 = arith.constant 8 : index
    %c384_59 = arith.constant 384 : index
    %73 = vector.load %arg7[%c8_58, %c384_59] : memref<64x512xf32, #tpu.memory_space<vmem>>, vector<8x128xf32>
    %c0_60 = arith.constant 0 : index
    %c384_61 = arith.constant 384 : index
    %74 = vector.load %arg2[%c0_60, %c384_61] : memref<128x512xbf16, #tpu.memory_space<vmem>>, vector<128x128xbf16>
    %cst_62 = arith.constant dense<0.000000e+00> : vector<8x128xf32>
    %75 = tpu.matmul %60, %74, %cst_62 {dimension_numbers = #tpu.dot_dimension_numbers<[1], [0], [0], [1], [0, 0, 1, 1], [], []>} : vector<8x128xbf16>, vector<128x128xbf16>, vector<8x128xf32> -> vector<8x128xf32>
    %76 = arith.addf %73, %75 : vector<8x128xf32>
    %cst_63 = arith.constant 5.000000e-01 : f32
    %77 = vector.broadcast %cst_63 : f32 to vector<8x128xf32>
    %78 = arith.mulf %77, %64 : vector<8x128xf32>
    %79 = math.tanh %78 : vector<8x128xf32>
    %cst_64 = arith.constant 5.000000e-01 : f32
    %80 = vector.broadcast %cst_64 : f32 to vector<8x128xf32>
    %81 = arith.mulf %80, %79 : vector<8x128xf32>
    %cst_65 = arith.constant 5.000000e-01 : f32
    %82 = vector.broadcast %cst_65 : f32 to vector<8x128xf32>
    %83 = arith.addf %81, %82 : vector<8x128xf32>
    %cst_66 = arith.constant 5.000000e-01 : f32
    %84 = vector.broadcast %cst_66 : f32 to vector<8x128xf32>
    %85 = arith.mulf %84, %68 : vector<8x128xf32>
    %86 = math.tanh %85 : vector<8x128xf32>
    %cst_67 = arith.constant 5.000000e-01 : f32
    %87 = vector.broadcast %cst_67 : f32 to vector<8x128xf32>
    %88 = arith.mulf %87, %86 : vector<8x128xf32>
    %cst_68 = arith.constant 5.000000e-01 : f32
    %89 = vector.broadcast %cst_68 : f32 to vector<8x128xf32>
    %90 = arith.addf %88, %89 : vector<8x128xf32>
    %91 = math.tanh %72 : vector<8x128xf32>
    %cst_69 = arith.constant 5.000000e-01 : f32
    %92 = vector.broadcast %cst_69 : f32 to vector<8x128xf32>
    %93 = arith.mulf %92, %76 : vector<8x128xf32>
    %94 = math.tanh %93 : vector<8x128xf32>
    %cst_70 = arith.constant 5.000000e-01 : f32
    %95 = vector.broadcast %cst_70 : f32 to vector<8x128xf32>
    %96 = arith.mulf %95, %94 : vector<8x128xf32>
    %cst_71 = arith.constant 5.000000e-01 : f32
    %97 = vector.broadcast %cst_71 : f32 to vector<8x128xf32>
    %98 = arith.addf %96, %97 : vector<8x128xf32>
    %99 = arith.mulf %90, %57 : vector<8x128xf32>
    %100 = arith.mulf %83, %91 : vector<8x128xf32>
    %101 = arith.addf %99, %100 : vector<8x128xf32>
    %102 = math.tanh %101 : vector<8x128xf32>
    %103 = arith.mulf %98, %102 : vector<8x128xf32>
    %104 = arith.truncf %103 : vector<8x128xf32> to vector<8x128xbf16>
    %c16 = arith.constant 16 : index
    %c0_72 = arith.constant 0 : index
    %105 = vector.load %arg7[%c16, %c0_72] : memref<64x512xf32, #tpu.memory_space<vmem>>, vector<8x128xf32>
    %c0_73 = arith.constant 0 : index
    %c0_74 = arith.constant 0 : index
    %106 = vector.load %arg2[%c0_73, %c0_74] : memref<128x512xbf16, #tpu.memory_space<vmem>>, vector<128x128xbf16>
    %cst_75 = arith.constant dense<0.000000e+00> : vector<8x128xf32>
    %107 = tpu.matmul %104, %106, %cst_75 {dimension_numbers = #tpu.dot_dimension_numbers<[1], [0], [0], [1], [0, 0, 1, 1], [], []>} : vector<8x128xbf16>, vector<128x128xbf16>, vector<8x128xf32> -> vector<8x128xf32>
    %108 = arith.addf %105, %107 : vector<8x128xf32>
    %c16_76 = arith.constant 16 : index
    %c128_77 = arith.constant 128 : index
    %109 = vector.load %arg7[%c16_76, %c128_77] : memref<64x512xf32, #tpu.memory_space<vmem>>, vector<8x128xf32>
    %c0_78 = arith.constant 0 : index
    %c128_79 = arith.constant 128 : index
    %110 = vector.load %arg2[%c0_78, %c128_79] : memref<128x512xbf16, #tpu.memory_space<vmem>>, vector<128x128xbf16>
    %cst_80 = arith.constant dense<0.000000e+00> : vector<8x128xf32>
    %111 = tpu.matmul %104, %110, %cst_80 {dimension_numbers = #tpu.dot_dimension_numbers<[1], [0], [0], [1], [0, 0, 1, 1], [], []>} : vector<8x128xbf16>, vector<128x128xbf16>, vector<8x128xf32> -> vector<8x128xf32>
    %112 = arith.addf %109, %111 : vector<8x128xf32>
    %c16_81 = arith.constant 16 : index
    %c256_82 = arith.constant 256 : index
    %113 = vector.load %arg7[%c16_81, %c256_82] : memref<64x512xf32, #tpu.memory_space<vmem>>, vector<8x128xf32>
    %c0_83 = arith.constant 0 : index
    %c256_84 = arith.constant 256 : index
    %114 = vector.load %arg2[%c0_83, %c256_84] : memref<128x512xbf16, #tpu.memory_space<vmem>>, vector<128x128xbf16>
    %cst_85 = arith.constant dense<0.000000e+00> : vector<8x128xf32>
    %115 = tpu.matmul %104, %114, %cst_85 {dimension_numbers = #tpu.dot_dimension_numbers<[1], [0], [0], [1], [0, 0, 1, 1], [], []>} : vector<8x128xbf16>, vector<128x128xbf16>, vector<8x128xf32> -> vector<8x128xf32>
    %116 = arith.addf %113, %115 : vector<8x128xf32>
    %c16_86 = arith.constant 16 : index
    %c384_87 = arith.constant 384 : index
    %117 = vector.load %arg7[%c16_86, %c384_87] : memref<64x512xf32, #tpu.memory_space<vmem>>, vector<8x128xf32>
    %c0_88 = arith.constant 0 : index
    %c384_89 = arith.constant 384 : index
    %118 = vector.load %arg2[%c0_88, %c384_89] : memref<128x512xbf16, #tpu.memory_space<vmem>>, vector<128x128xbf16>
    %cst_90 = arith.constant dense<0.000000e+00> : vector<8x128xf32>
    %119 = tpu.matmul %104, %118, %cst_90 {dimension_numbers = #tpu.dot_dimension_numbers<[1], [0], [0], [1], [0, 0, 1, 1], [], []>} : vector<8x128xbf16>, vector<128x128xbf16>, vector<8x128xf32> -> vector<8x128xf32>
    %120 = arith.addf %117, %119 : vector<8x128xf32>
    %cst_91 = arith.constant 5.000000e-01 : f32
    %121 = vector.broadcast %cst_91 : f32 to vector<8x128xf32>
    %122 = arith.mulf %121, %108 : vector<8x128xf32>
    %123 = math.tanh %122 : vector<8x128xf32>
    %cst_92 = arith.constant 5.000000e-01 : f32
    %124 = vector.broadcast %cst_92 : f32 to vector<8x128xf32>
    %125 = arith.mulf %124, %123 : vector<8x128xf32>
    %cst_93 = arith.constant 5.000000e-01 : f32
    %126 = vector.broadcast %cst_93 : f32 to vector<8x128xf32>
    %127 = arith.addf %125, %126 : vector<8x128xf32>
    %cst_94 = arith.constant 5.000000e-01 : f32
    %128 = vector.broadcast %cst_94 : f32 to vector<8x128xf32>
    %129 = arith.mulf %128, %112 : vector<8x128xf32>
    %130 = math.tanh %129 : vector<8x128xf32>
    %cst_95 = arith.constant 5.000000e-01 : f32
    %131 = vector.broadcast %cst_95 : f32 to vector<8x128xf32>
    %132 = arith.mulf %131, %130 : vector<8x128xf32>
    %cst_96 = arith.constant 5.000000e-01 : f32
    %133 = vector.broadcast %cst_96 : f32 to vector<8x128xf32>
    %134 = arith.addf %132, %133 : vector<8x128xf32>
    %135 = math.tanh %116 : vector<8x128xf32>
    %cst_97 = arith.constant 5.000000e-01 : f32
    %136 = vector.broadcast %cst_97 : f32 to vector<8x128xf32>
    %137 = arith.mulf %136, %120 : vector<8x128xf32>
    %138 = math.tanh %137 : vector<8x128xf32>
    %cst_98 = arith.constant 5.000000e-01 : f32
    %139 = vector.broadcast %cst_98 : f32 to vector<8x128xf32>
    %140 = arith.mulf %139, %138 : vector<8x128xf32>
    %cst_99 = arith.constant 5.000000e-01 : f32
    %141 = vector.broadcast %cst_99 : f32 to vector<8x128xf32>
    %142 = arith.addf %140, %141 : vector<8x128xf32>
    %143 = arith.mulf %134, %101 : vector<8x128xf32>
    %144 = arith.mulf %127, %135 : vector<8x128xf32>
    %145 = arith.addf %143, %144 : vector<8x128xf32>
    %146 = math.tanh %145 : vector<8x128xf32>
    %147 = arith.mulf %142, %146 : vector<8x128xf32>
    %148 = arith.truncf %147 : vector<8x128xf32> to vector<8x128xbf16>
    %c24 = arith.constant 24 : index
    %c0_100 = arith.constant 0 : index
    %149 = vector.load %arg7[%c24, %c0_100] : memref<64x512xf32, #tpu.memory_space<vmem>>, vector<8x128xf32>
    %c0_101 = arith.constant 0 : index
    %c0_102 = arith.constant 0 : index
    %150 = vector.load %arg2[%c0_101, %c0_102] : memref<128x512xbf16, #tpu.memory_space<vmem>>, vector<128x128xbf16>
    %cst_103 = arith.constant dense<0.000000e+00> : vector<8x128xf32>
    %151 = tpu.matmul %148, %150, %cst_103 {dimension_numbers = #tpu.dot_dimension_numbers<[1], [0], [0], [1], [0, 0, 1, 1], [], []>} : vector<8x128xbf16>, vector<128x128xbf16>, vector<8x128xf32> -> vector<8x128xf32>
    %152 = arith.addf %149, %151 : vector<8x128xf32>
    %c24_104 = arith.constant 24 : index
    %c128_105 = arith.constant 128 : index
    %153 = vector.load %arg7[%c24_104, %c128_105] : memref<64x512xf32, #tpu.memory_space<vmem>>, vector<8x128xf32>
    %c0_106 = arith.constant 0 : index
    %c128_107 = arith.constant 128 : index
    %154 = vector.load %arg2[%c0_106, %c128_107] : memref<128x512xbf16, #tpu.memory_space<vmem>>, vector<128x128xbf16>
    %cst_108 = arith.constant dense<0.000000e+00> : vector<8x128xf32>
    %155 = tpu.matmul %148, %154, %cst_108 {dimension_numbers = #tpu.dot_dimension_numbers<[1], [0], [0], [1], [0, 0, 1, 1], [], []>} : vector<8x128xbf16>, vector<128x128xbf16>, vector<8x128xf32> -> vector<8x128xf32>
    %156 = arith.addf %153, %155 : vector<8x128xf32>
    %c24_109 = arith.constant 24 : index
    %c256_110 = arith.constant 256 : index
    %157 = vector.load %arg7[%c24_109, %c256_110] : memref<64x512xf32, #tpu.memory_space<vmem>>, vector<8x128xf32>
    %c0_111 = arith.constant 0 : index
    %c256_112 = arith.constant 256 : index
    %158 = vector.load %arg2[%c0_111, %c256_112] : memref<128x512xbf16, #tpu.memory_space<vmem>>, vector<128x128xbf16>
    %cst_113 = arith.constant dense<0.000000e+00> : vector<8x128xf32>
    %159 = tpu.matmul %148, %158, %cst_113 {dimension_numbers = #tpu.dot_dimension_numbers<[1], [0], [0], [1], [0, 0, 1, 1], [], []>} : vector<8x128xbf16>, vector<128x128xbf16>, vector<8x128xf32> -> vector<8x128xf32>
    %160 = arith.addf %157, %159 : vector<8x128xf32>
    %c24_114 = arith.constant 24 : index
    %c384_115 = arith.constant 384 : index
    %161 = vector.load %arg7[%c24_114, %c384_115] : memref<64x512xf32, #tpu.memory_space<vmem>>, vector<8x128xf32>
    %c0_116 = arith.constant 0 : index
    %c384_117 = arith.constant 384 : index
    %162 = vector.load %arg2[%c0_116, %c384_117] : memref<128x512xbf16, #tpu.memory_space<vmem>>, vector<128x128xbf16>
    %cst_118 = arith.constant dense<0.000000e+00> : vector<8x128xf32>
    %163 = tpu.matmul %148, %162, %cst_118 {dimension_numbers = #tpu.dot_dimension_numbers<[1], [0], [0], [1], [0, 0, 1, 1], [], []>} : vector<8x128xbf16>, vector<128x128xbf16>, vector<8x128xf32> -> vector<8x128xf32>
    %164 = arith.addf %161, %163 : vector<8x128xf32>
    %cst_119 = arith.constant 5.000000e-01 : f32
    %165 = vector.broadcast %cst_119 : f32 to vector<8x128xf32>
    %166 = arith.mulf %165, %152 : vector<8x128xf32>
    %167 = math.tanh %166 : vector<8x128xf32>
    %cst_120 = arith.constant 5.000000e-01 : f32
    %168 = vector.broadcast %cst_120 : f32 to vector<8x128xf32>
    %169 = arith.mulf %168, %167 : vector<8x128xf32>
    %cst_121 = arith.constant 5.000000e-01 : f32
    %170 = vector.broadcast %cst_121 : f32 to vector<8x128xf32>
    %171 = arith.addf %169, %170 : vector<8x128xf32>
    %cst_122 = arith.constant 5.000000e-01 : f32
    %172 = vector.broadcast %cst_122 : f32 to vector<8x128xf32>
    %173 = arith.mulf %172, %156 : vector<8x128xf32>
    %174 = math.tanh %173 : vector<8x128xf32>
    %cst_123 = arith.constant 5.000000e-01 : f32
    %175 = vector.broadcast %cst_123 : f32 to vector<8x128xf32>
    %176 = arith.mulf %175, %174 : vector<8x128xf32>
    %cst_124 = arith.constant 5.000000e-01 : f32
    %177 = vector.broadcast %cst_124 : f32 to vector<8x128xf32>
    %178 = arith.addf %176, %177 : vector<8x128xf32>
    %179 = math.tanh %160 : vector<8x128xf32>
    %cst_125 = arith.constant 5.000000e-01 : f32
    %180 = vector.broadcast %cst_125 : f32 to vector<8x128xf32>
    %181 = arith.mulf %180, %164 : vector<8x128xf32>
    %182 = math.tanh %181 : vector<8x128xf32>
    %cst_126 = arith.constant 5.000000e-01 : f32
    %183 = vector.broadcast %cst_126 : f32 to vector<8x128xf32>
    %184 = arith.mulf %183, %182 : vector<8x128xf32>
    %cst_127 = arith.constant 5.000000e-01 : f32
    %185 = vector.broadcast %cst_127 : f32 to vector<8x128xf32>
    %186 = arith.addf %184, %185 : vector<8x128xf32>
    %187 = arith.mulf %178, %145 : vector<8x128xf32>
    %188 = arith.mulf %171, %179 : vector<8x128xf32>
    %189 = arith.addf %187, %188 : vector<8x128xf32>
    %190 = math.tanh %189 : vector<8x128xf32>
    %191 = arith.mulf %186, %190 : vector<8x128xf32>
    %192 = arith.truncf %191 : vector<8x128xf32> to vector<8x128xbf16>
    %c32 = arith.constant 32 : index
    %c0_128 = arith.constant 0 : index
    %193 = vector.load %arg7[%c32, %c0_128] : memref<64x512xf32, #tpu.memory_space<vmem>>, vector<8x128xf32>
    %c0_129 = arith.constant 0 : index
    %c0_130 = arith.constant 0 : index
    %194 = vector.load %arg2[%c0_129, %c0_130] : memref<128x512xbf16, #tpu.memory_space<vmem>>, vector<128x128xbf16>
    %cst_131 = arith.constant dense<0.000000e+00> : vector<8x128xf32>
    %195 = tpu.matmul %192, %194, %cst_131 {dimension_numbers = #tpu.dot_dimension_numbers<[1], [0], [0], [1], [0, 0, 1, 1], [], []>} : vector<8x128xbf16>, vector<128x128xbf16>, vector<8x128xf32> -> vector<8x128xf32>
    %196 = arith.addf %193, %195 : vector<8x128xf32>
    %c32_132 = arith.constant 32 : index
    %c128_133 = arith.constant 128 : index
    %197 = vector.load %arg7[%c32_132, %c128_133] : memref<64x512xf32, #tpu.memory_space<vmem>>, vector<8x128xf32>
    %c0_134 = arith.constant 0 : index
    %c128_135 = arith.constant 128 : index
    %198 = vector.load %arg2[%c0_134, %c128_135] : memref<128x512xbf16, #tpu.memory_space<vmem>>, vector<128x128xbf16>
    %cst_136 = arith.constant dense<0.000000e+00> : vector<8x128xf32>
    %199 = tpu.matmul %192, %198, %cst_136 {dimension_numbers = #tpu.dot_dimension_numbers<[1], [0], [0], [1], [0, 0, 1, 1], [], []>} : vector<8x128xbf16>, vector<128x128xbf16>, vector<8x128xf32> -> vector<8x128xf32>
    %200 = arith.addf %197, %199 : vector<8x128xf32>
    %c32_137 = arith.constant 32 : index
    %c256_138 = arith.constant 256 : index
    %201 = vector.load %arg7[%c32_137, %c256_138] : memref<64x512xf32, #tpu.memory_space<vmem>>, vector<8x128xf32>
    %c0_139 = arith.constant 0 : index
    %c256_140 = arith.constant 256 : index
    %202 = vector.load %arg2[%c0_139, %c256_140] : memref<128x512xbf16, #tpu.memory_space<vmem>>, vector<128x128xbf16>
    %cst_141 = arith.constant dense<0.000000e+00> : vector<8x128xf32>
    %203 = tpu.matmul %192, %202, %cst_141 {dimension_numbers = #tpu.dot_dimension_numbers<[1], [0], [0], [1], [0, 0, 1, 1], [], []>} : vector<8x128xbf16>, vector<128x128xbf16>, vector<8x128xf32> -> vector<8x128xf32>
    %204 = arith.addf %201, %203 : vector<8x128xf32>
    %c32_142 = arith.constant 32 : index
    %c384_143 = arith.constant 384 : index
    %205 = vector.load %arg7[%c32_142, %c384_143] : memref<64x512xf32, #tpu.memory_space<vmem>>, vector<8x128xf32>
    %c0_144 = arith.constant 0 : index
    %c384_145 = arith.constant 384 : index
    %206 = vector.load %arg2[%c0_144, %c384_145] : memref<128x512xbf16, #tpu.memory_space<vmem>>, vector<128x128xbf16>
    %cst_146 = arith.constant dense<0.000000e+00> : vector<8x128xf32>
    %207 = tpu.matmul %192, %206, %cst_146 {dimension_numbers = #tpu.dot_dimension_numbers<[1], [0], [0], [1], [0, 0, 1, 1], [], []>} : vector<8x128xbf16>, vector<128x128xbf16>, vector<8x128xf32> -> vector<8x128xf32>
    %208 = arith.addf %205, %207 : vector<8x128xf32>
    %cst_147 = arith.constant 5.000000e-01 : f32
    %209 = vector.broadcast %cst_147 : f32 to vector<8x128xf32>
    %210 = arith.mulf %209, %196 : vector<8x128xf32>
    %211 = math.tanh %210 : vector<8x128xf32>
    %cst_148 = arith.constant 5.000000e-01 : f32
    %212 = vector.broadcast %cst_148 : f32 to vector<8x128xf32>
    %213 = arith.mulf %212, %211 : vector<8x128xf32>
    %cst_149 = arith.constant 5.000000e-01 : f32
    %214 = vector.broadcast %cst_149 : f32 to vector<8x128xf32>
    %215 = arith.addf %213, %214 : vector<8x128xf32>
    %cst_150 = arith.constant 5.000000e-01 : f32
    %216 = vector.broadcast %cst_150 : f32 to vector<8x128xf32>
    %217 = arith.mulf %216, %200 : vector<8x128xf32>
    %218 = math.tanh %217 : vector<8x128xf32>
    %cst_151 = arith.constant 5.000000e-01 : f32
    %219 = vector.broadcast %cst_151 : f32 to vector<8x128xf32>
    %220 = arith.mulf %219, %218 : vector<8x128xf32>
    %cst_152 = arith.constant 5.000000e-01 : f32
    %221 = vector.broadcast %cst_152 : f32 to vector<8x128xf32>
    %222 = arith.addf %220, %221 : vector<8x128xf32>
    %223 = math.tanh %204 : vector<8x128xf32>
    %cst_153 = arith.constant 5.000000e-01 : f32
    %224 = vector.broadcast %cst_153 : f32 to vector<8x128xf32>
    %225 = arith.mulf %224, %208 : vector<8x128xf32>
    %226 = math.tanh %225 : vector<8x128xf32>
    %cst_154 = arith.constant 5.000000e-01 : f32
    %227 = vector.broadcast %cst_154 : f32 to vector<8x128xf32>
    %228 = arith.mulf %227, %226 : vector<8x128xf32>
    %cst_155 = arith.constant 5.000000e-01 : f32
    %229 = vector.broadcast %cst_155 : f32 to vector<8x128xf32>
    %230 = arith.addf %228, %229 : vector<8x128xf32>
    %231 = arith.mulf %222, %189 : vector<8x128xf32>
    %232 = arith.mulf %215, %223 : vector<8x128xf32>
    %233 = arith.addf %231, %232 : vector<8x128xf32>
    %234 = math.tanh %233 : vector<8x128xf32>
    %235 = arith.mulf %230, %234 : vector<8x128xf32>
    %236 = arith.truncf %235 : vector<8x128xf32> to vector<8x128xbf16>
    %c40 = arith.constant 40 : index
    %c0_156 = arith.constant 0 : index
    %237 = vector.load %arg7[%c40, %c0_156] : memref<64x512xf32, #tpu.memory_space<vmem>>, vector<8x128xf32>
    %c0_157 = arith.constant 0 : index
    %c0_158 = arith.constant 0 : index
    %238 = vector.load %arg2[%c0_157, %c0_158] : memref<128x512xbf16, #tpu.memory_space<vmem>>, vector<128x128xbf16>
    %cst_159 = arith.constant dense<0.000000e+00> : vector<8x128xf32>
    %239 = tpu.matmul %236, %238, %cst_159 {dimension_numbers = #tpu.dot_dimension_numbers<[1], [0], [0], [1], [0, 0, 1, 1], [], []>} : vector<8x128xbf16>, vector<128x128xbf16>, vector<8x128xf32> -> vector<8x128xf32>
    %240 = arith.addf %237, %239 : vector<8x128xf32>
    %c40_160 = arith.constant 40 : index
    %c128_161 = arith.constant 128 : index
    %241 = vector.load %arg7[%c40_160, %c128_161] : memref<64x512xf32, #tpu.memory_space<vmem>>, vector<8x128xf32>
    %c0_162 = arith.constant 0 : index
    %c128_163 = arith.constant 128 : index
    %242 = vector.load %arg2[%c0_162, %c128_163] : memref<128x512xbf16, #tpu.memory_space<vmem>>, vector<128x128xbf16>
    %cst_164 = arith.constant dense<0.000000e+00> : vector<8x128xf32>
    %243 = tpu.matmul %236, %242, %cst_164 {dimension_numbers = #tpu.dot_dimension_numbers<[1], [0], [0], [1], [0, 0, 1, 1], [], []>} : vector<8x128xbf16>, vector<128x128xbf16>, vector<8x128xf32> -> vector<8x128xf32>
    %244 = arith.addf %241, %243 : vector<8x128xf32>
    %c40_165 = arith.constant 40 : index
    %c256_166 = arith.constant 256 : index
    %245 = vector.load %arg7[%c40_165, %c256_166] : memref<64x512xf32, #tpu.memory_space<vmem>>, vector<8x128xf32>
    %c0_167 = arith.constant 0 : index
    %c256_168 = arith.constant 256 : index
    %246 = vector.load %arg2[%c0_167, %c256_168] : memref<128x512xbf16, #tpu.memory_space<vmem>>, vector<128x128xbf16>
    %cst_169 = arith.constant dense<0.000000e+00> : vector<8x128xf32>
    %247 = tpu.matmul %236, %246, %cst_169 {dimension_numbers = #tpu.dot_dimension_numbers<[1], [0], [0], [1], [0, 0, 1, 1], [], []>} : vector<8x128xbf16>, vector<128x128xbf16>, vector<8x128xf32> -> vector<8x128xf32>
    %248 = arith.addf %245, %247 : vector<8x128xf32>
    %c40_170 = arith.constant 40 : index
    %c384_171 = arith.constant 384 : index
    %249 = vector.load %arg7[%c40_170, %c384_171] : memref<64x512xf32, #tpu.memory_space<vmem>>, vector<8x128xf32>
    %c0_172 = arith.constant 0 : index
    %c384_173 = arith.constant 384 : index
    %250 = vector.load %arg2[%c0_172, %c384_173] : memref<128x512xbf16, #tpu.memory_space<vmem>>, vector<128x128xbf16>
    %cst_174 = arith.constant dense<0.000000e+00> : vector<8x128xf32>
    %251 = tpu.matmul %236, %250, %cst_174 {dimension_numbers = #tpu.dot_dimension_numbers<[1], [0], [0], [1], [0, 0, 1, 1], [], []>} : vector<8x128xbf16>, vector<128x128xbf16>, vector<8x128xf32> -> vector<8x128xf32>
    %252 = arith.addf %249, %251 : vector<8x128xf32>
    %cst_175 = arith.constant 5.000000e-01 : f32
    %253 = vector.broadcast %cst_175 : f32 to vector<8x128xf32>
    %254 = arith.mulf %253, %240 : vector<8x128xf32>
    %255 = math.tanh %254 : vector<8x128xf32>
    %cst_176 = arith.constant 5.000000e-01 : f32
    %256 = vector.broadcast %cst_176 : f32 to vector<8x128xf32>
    %257 = arith.mulf %256, %255 : vector<8x128xf32>
    %cst_177 = arith.constant 5.000000e-01 : f32
    %258 = vector.broadcast %cst_177 : f32 to vector<8x128xf32>
    %259 = arith.addf %257, %258 : vector<8x128xf32>
    %cst_178 = arith.constant 5.000000e-01 : f32
    %260 = vector.broadcast %cst_178 : f32 to vector<8x128xf32>
    %261 = arith.mulf %260, %244 : vector<8x128xf32>
    %262 = math.tanh %261 : vector<8x128xf32>
    %cst_179 = arith.constant 5.000000e-01 : f32
    %263 = vector.broadcast %cst_179 : f32 to vector<8x128xf32>
    %264 = arith.mulf %263, %262 : vector<8x128xf32>
    %cst_180 = arith.constant 5.000000e-01 : f32
    %265 = vector.broadcast %cst_180 : f32 to vector<8x128xf32>
    %266 = arith.addf %264, %265 : vector<8x128xf32>
    %267 = math.tanh %248 : vector<8x128xf32>
    %cst_181 = arith.constant 5.000000e-01 : f32
    %268 = vector.broadcast %cst_181 : f32 to vector<8x128xf32>
    %269 = arith.mulf %268, %252 : vector<8x128xf32>
    %270 = math.tanh %269 : vector<8x128xf32>
    %cst_182 = arith.constant 5.000000e-01 : f32
    %271 = vector.broadcast %cst_182 : f32 to vector<8x128xf32>
    %272 = arith.mulf %271, %270 : vector<8x128xf32>
    %cst_183 = arith.constant 5.000000e-01 : f32
    %273 = vector.broadcast %cst_183 : f32 to vector<8x128xf32>
    %274 = arith.addf %272, %273 : vector<8x128xf32>
    %275 = arith.mulf %266, %233 : vector<8x128xf32>
    %276 = arith.mulf %259, %267 : vector<8x128xf32>
    %277 = arith.addf %275, %276 : vector<8x128xf32>
    %278 = math.tanh %277 : vector<8x128xf32>
    %279 = arith.mulf %274, %278 : vector<8x128xf32>
    %280 = arith.truncf %279 : vector<8x128xf32> to vector<8x128xbf16>
    %c48 = arith.constant 48 : index
    %c0_184 = arith.constant 0 : index
    %281 = vector.load %arg7[%c48, %c0_184] : memref<64x512xf32, #tpu.memory_space<vmem>>, vector<8x128xf32>
    %c0_185 = arith.constant 0 : index
    %c0_186 = arith.constant 0 : index
    %282 = vector.load %arg2[%c0_185, %c0_186] : memref<128x512xbf16, #tpu.memory_space<vmem>>, vector<128x128xbf16>
    %cst_187 = arith.constant dense<0.000000e+00> : vector<8x128xf32>
    %283 = tpu.matmul %280, %282, %cst_187 {dimension_numbers = #tpu.dot_dimension_numbers<[1], [0], [0], [1], [0, 0, 1, 1], [], []>} : vector<8x128xbf16>, vector<128x128xbf16>, vector<8x128xf32> -> vector<8x128xf32>
    %284 = arith.addf %281, %283 : vector<8x128xf32>
    %c48_188 = arith.constant 48 : index
    %c128_189 = arith.constant 128 : index
    %285 = vector.load %arg7[%c48_188, %c128_189] : memref<64x512xf32, #tpu.memory_space<vmem>>, vector<8x128xf32>
    %c0_190 = arith.constant 0 : index
    %c128_191 = arith.constant 128 : index
    %286 = vector.load %arg2[%c0_190, %c128_191] : memref<128x512xbf16, #tpu.memory_space<vmem>>, vector<128x128xbf16>
    %cst_192 = arith.constant dense<0.000000e+00> : vector<8x128xf32>
    %287 = tpu.matmul %280, %286, %cst_192 {dimension_numbers = #tpu.dot_dimension_numbers<[1], [0], [0], [1], [0, 0, 1, 1], [], []>} : vector<8x128xbf16>, vector<128x128xbf16>, vector<8x128xf32> -> vector<8x128xf32>
    %288 = arith.addf %285, %287 : vector<8x128xf32>
    %c48_193 = arith.constant 48 : index
    %c256_194 = arith.constant 256 : index
    %289 = vector.load %arg7[%c48_193, %c256_194] : memref<64x512xf32, #tpu.memory_space<vmem>>, vector<8x128xf32>
    %c0_195 = arith.constant 0 : index
    %c256_196 = arith.constant 256 : index
    %290 = vector.load %arg2[%c0_195, %c256_196] : memref<128x512xbf16, #tpu.memory_space<vmem>>, vector<128x128xbf16>
    %cst_197 = arith.constant dense<0.000000e+00> : vector<8x128xf32>
    %291 = tpu.matmul %280, %290, %cst_197 {dimension_numbers = #tpu.dot_dimension_numbers<[1], [0], [0], [1], [0, 0, 1, 1], [], []>} : vector<8x128xbf16>, vector<128x128xbf16>, vector<8x128xf32> -> vector<8x128xf32>
    %292 = arith.addf %289, %291 : vector<8x128xf32>
    %c48_198 = arith.constant 48 : index
    %c384_199 = arith.constant 384 : index
    %293 = vector.load %arg7[%c48_198, %c384_199] : memref<64x512xf32, #tpu.memory_space<vmem>>, vector<8x128xf32>
    %c0_200 = arith.constant 0 : index
    %c384_201 = arith.constant 384 : index
    %294 = vector.load %arg2[%c0_200, %c384_201] : memref<128x512xbf16, #tpu.memory_space<vmem>>, vector<128x128xbf16>
    %cst_202 = arith.constant dense<0.000000e+00> : vector<8x128xf32>
    %295 = tpu.matmul %280, %294, %cst_202 {dimension_numbers = #tpu.dot_dimension_numbers<[1], [0], [0], [1], [0, 0, 1, 1], [], []>} : vector<8x128xbf16>, vector<128x128xbf16>, vector<8x128xf32> -> vector<8x128xf32>
    %296 = arith.addf %293, %295 : vector<8x128xf32>
    %cst_203 = arith.constant 5.000000e-01 : f32
    %297 = vector.broadcast %cst_203 : f32 to vector<8x128xf32>
    %298 = arith.mulf %297, %284 : vector<8x128xf32>
    %299 = math.tanh %298 : vector<8x128xf32>
    %cst_204 = arith.constant 5.000000e-01 : f32
    %300 = vector.broadcast %cst_204 : f32 to vector<8x128xf32>
    %301 = arith.mulf %300, %299 : vector<8x128xf32>
    %cst_205 = arith.constant 5.000000e-01 : f32
    %302 = vector.broadcast %cst_205 : f32 to vector<8x128xf32>
    %303 = arith.addf %301, %302 : vector<8x128xf32>
    %cst_206 = arith.constant 5.000000e-01 : f32
    %304 = vector.broadcast %cst_206 : f32 to vector<8x128xf32>
    %305 = arith.mulf %304, %288 : vector<8x128xf32>
    %306 = math.tanh %305 : vector<8x128xf32>
    %cst_207 = arith.constant 5.000000e-01 : f32
    %307 = vector.broadcast %cst_207 : f32 to vector<8x128xf32>
    %308 = arith.mulf %307, %306 : vector<8x128xf32>
    %cst_208 = arith.constant 5.000000e-01 : f32
    %309 = vector.broadcast %cst_208 : f32 to vector<8x128xf32>
    %310 = arith.addf %308, %309 : vector<8x128xf32>
    %311 = math.tanh %292 : vector<8x128xf32>
    %cst_209 = arith.constant 5.000000e-01 : f32
    %312 = vector.broadcast %cst_209 : f32 to vector<8x128xf32>
    %313 = arith.mulf %312, %296 : vector<8x128xf32>
    %314 = math.tanh %313 : vector<8x128xf32>
    %cst_210 = arith.constant 5.000000e-01 : f32
    %315 = vector.broadcast %cst_210 : f32 to vector<8x128xf32>
    %316 = arith.mulf %315, %314 : vector<8x128xf32>
    %cst_211 = arith.constant 5.000000e-01 : f32
    %317 = vector.broadcast %cst_211 : f32 to vector<8x128xf32>
    %318 = arith.addf %316, %317 : vector<8x128xf32>
    %319 = arith.mulf %310, %277 : vector<8x128xf32>
    %320 = arith.mulf %303, %311 : vector<8x128xf32>
    %321 = arith.addf %319, %320 : vector<8x128xf32>
    %322 = math.tanh %321 : vector<8x128xf32>
    %323 = arith.mulf %318, %322 : vector<8x128xf32>
    %324 = arith.truncf %323 : vector<8x128xf32> to vector<8x128xbf16>
    %c56 = arith.constant 56 : index
    %c0_212 = arith.constant 0 : index
    %325 = vector.load %arg7[%c56, %c0_212] : memref<64x512xf32, #tpu.memory_space<vmem>>, vector<8x128xf32>
    %c0_213 = arith.constant 0 : index
    %c0_214 = arith.constant 0 : index
    %326 = vector.load %arg2[%c0_213, %c0_214] : memref<128x512xbf16, #tpu.memory_space<vmem>>, vector<128x128xbf16>
    %cst_215 = arith.constant dense<0.000000e+00> : vector<8x128xf32>
    %327 = tpu.matmul %324, %326, %cst_215 {dimension_numbers = #tpu.dot_dimension_numbers<[1], [0], [0], [1], [0, 0, 1, 1], [], []>} : vector<8x128xbf16>, vector<128x128xbf16>, vector<8x128xf32> -> vector<8x128xf32>
    %328 = arith.addf %325, %327 : vector<8x128xf32>
    %c56_216 = arith.constant 56 : index
    %c128_217 = arith.constant 128 : index
    %329 = vector.load %arg7[%c56_216, %c128_217] : memref<64x512xf32, #tpu.memory_space<vmem>>, vector<8x128xf32>
    %c0_218 = arith.constant 0 : index
    %c128_219 = arith.constant 128 : index
    %330 = vector.load %arg2[%c0_218, %c128_219] : memref<128x512xbf16, #tpu.memory_space<vmem>>, vector<128x128xbf16>
    %cst_220 = arith.constant dense<0.000000e+00> : vector<8x128xf32>
    %331 = tpu.matmul %324, %330, %cst_220 {dimension_numbers = #tpu.dot_dimension_numbers<[1], [0], [0], [1], [0, 0, 1, 1], [], []>} : vector<8x128xbf16>, vector<128x128xbf16>, vector<8x128xf32> -> vector<8x128xf32>
    %332 = arith.addf %329, %331 : vector<8x128xf32>
    %c56_221 = arith.constant 56 : index
    %c256_222 = arith.constant 256 : index
    %333 = vector.load %arg7[%c56_221, %c256_222] : memref<64x512xf32, #tpu.memory_space<vmem>>, vector<8x128xf32>
    %c0_223 = arith.constant 0 : index
    %c256_224 = arith.constant 256 : index
    %334 = vector.load %arg2[%c0_223, %c256_224] : memref<128x512xbf16, #tpu.memory_space<vmem>>, vector<128x128xbf16>
    %cst_225 = arith.constant dense<0.000000e+00> : vector<8x128xf32>
    %335 = tpu.matmul %324, %334, %cst_225 {dimension_numbers = #tpu.dot_dimension_numbers<[1], [0], [0], [1], [0, 0, 1, 1], [], []>} : vector<8x128xbf16>, vector<128x128xbf16>, vector<8x128xf32> -> vector<8x128xf32>
    %336 = arith.addf %333, %335 : vector<8x128xf32>
    %c56_226 = arith.constant 56 : index
    %c384_227 = arith.constant 384 : index
    %337 = vector.load %arg7[%c56_226, %c384_227] : memref<64x512xf32, #tpu.memory_space<vmem>>, vector<8x128xf32>
    %c0_228 = arith.constant 0 : index
    %c384_229 = arith.constant 384 : index
    %338 = vector.load %arg2[%c0_228, %c384_229] : memref<128x512xbf16, #tpu.memory_space<vmem>>, vector<128x128xbf16>
    %cst_230 = arith.constant dense<0.000000e+00> : vector<8x128xf32>
    %339 = tpu.matmul %324, %338, %cst_230 {dimension_numbers = #tpu.dot_dimension_numbers<[1], [0], [0], [1], [0, 0, 1, 1], [], []>} : vector<8x128xbf16>, vector<128x128xbf16>, vector<8x128xf32> -> vector<8x128xf32>
    %340 = arith.addf %337, %339 : vector<8x128xf32>
    %cst_231 = arith.constant 5.000000e-01 : f32
    %341 = vector.broadcast %cst_231 : f32 to vector<8x128xf32>
    %342 = arith.mulf %341, %328 : vector<8x128xf32>
    %343 = math.tanh %342 : vector<8x128xf32>
    %cst_232 = arith.constant 5.000000e-01 : f32
    %344 = vector.broadcast %cst_232 : f32 to vector<8x128xf32>
    %345 = arith.mulf %344, %343 : vector<8x128xf32>
    %cst_233 = arith.constant 5.000000e-01 : f32
    %346 = vector.broadcast %cst_233 : f32 to vector<8x128xf32>
    %347 = arith.addf %345, %346 : vector<8x128xf32>
    %cst_234 = arith.constant 5.000000e-01 : f32
    %348 = vector.broadcast %cst_234 : f32 to vector<8x128xf32>
    %349 = arith.mulf %348, %332 : vector<8x128xf32>
    %350 = math.tanh %349 : vector<8x128xf32>
    %cst_235 = arith.constant 5.000000e-01 : f32
    %351 = vector.broadcast %cst_235 : f32 to vector<8x128xf32>
    %352 = arith.mulf %351, %350 : vector<8x128xf32>
    %cst_236 = arith.constant 5.000000e-01 : f32
    %353 = vector.broadcast %cst_236 : f32 to vector<8x128xf32>
    %354 = arith.addf %352, %353 : vector<8x128xf32>
    %355 = math.tanh %336 : vector<8x128xf32>
    %cst_237 = arith.constant 5.000000e-01 : f32
    %356 = vector.broadcast %cst_237 : f32 to vector<8x128xf32>
    %357 = arith.mulf %356, %340 : vector<8x128xf32>
    %358 = math.tanh %357 : vector<8x128xf32>
    %cst_238 = arith.constant 5.000000e-01 : f32
    %359 = vector.broadcast %cst_238 : f32 to vector<8x128xf32>
    %360 = arith.mulf %359, %358 : vector<8x128xf32>
    %cst_239 = arith.constant 5.000000e-01 : f32
    %361 = vector.broadcast %cst_239 : f32 to vector<8x128xf32>
    %362 = arith.addf %360, %361 : vector<8x128xf32>
    %363 = arith.mulf %354, %321 : vector<8x128xf32>
    %364 = arith.mulf %347, %355 : vector<8x128xf32>
    %365 = arith.addf %363, %364 : vector<8x128xf32>
    %366 = math.tanh %365 : vector<8x128xf32>
    %367 = arith.mulf %362, %366 : vector<8x128xf32>
    %c0_240 = arith.constant 0 : index
    %c0_241 = arith.constant 0 : index
    %368 = vector.load %arg4[%c0_240, %c0_241] : memref<1x128xf32, #tpu.memory_space<vmem>>, vector<1x128xf32>
    %369 = vector.broadcast %368 : vector<1x128xf32> to vector<8x128xf32>
    %370 = arith.mulf %367, %369 : vector<8x128xf32>
    %cst_242 = arith.constant dense<0.000000e+00> : vector<8xf32>
    %371 = vector.multi_reduction <add>, %370, %cst_242 [1] : vector<8x128xf32> to vector<8xf32>
    %372 = vector.shape_cast %371 : vector<8xf32> to vector<8x1xf32>
    %c0_243 = arith.constant 0 : index
    %c0_244 = arith.constant 0 : index
    %373 = vector.load %arg5[%c0_243, %c0_244] : memref<1x1xf32, #tpu.memory_space<vmem>>, vector<1x1xf32>
    %374 = vector.broadcast %373 : vector<1x1xf32> to vector<8x1xf32>
    %375 = arith.addf %372, %374 : vector<8x1xf32>
    %c0_245 = arith.constant 0 : index
    %c0_246 = arith.constant 0 : index
    %376 = vector.load %arg6[%c0_245, %c0_246] : memref<8x1xf32, #tpu.memory_space<vmem>>, vector<8x1xf32>
    tpu.vector_store %arg6[%c0_245, %c0_246], %375 {strides = array<i32>} : memref<8x1xf32, #tpu.memory_space<vmem>>, vector<8x1xf32>,
    return
  }
}

</mosaic_0001>

<bundles_post_ra>
// kernel: tpu_custom_call.1
= control target key start
LH: loop header
LB: loop body
LE: loop exit
PB: predicated region body
PF: predicated region fallthrough
CT: control target
= control target key end

     0   :  { %s4858_s0 = inlined_call_operand.hbm [shape: bf16[64,128], index: 0, kind: input, shape index: {}]   ;;  %s4859_s1 = inlined_call_operand.hbm [shape: bf16[128,512], index: 1, kind: input, shape index: {}]   ;;  %s4860_s2 = inlined_call_operand.hbm [shape: bf16[128,512], index: 2, kind: input, shape index: {}]   ;;  %s4861_s3 = inlined_call_operand.vmem [shape: f32[1,512], index: 3, kind: input, shape index: {}]   ;;  %s4862_s4 = inlined_call_operand.vmem [shape: f32[1,128], index: 4, kind: input, shape index: {}]   ;;  %s4863_s5 = inlined_call_operand.<no memory space> [shape: f32[1,1], index: 5, kind: input, shape index: {}]   ;;  %s4864_s6 = inlined_call_operand.vmem [shape: f32[8,1], index: 6, kind: output, shape index: {}]  }
   0x1   :  { %v11_v0 = vstv %s4863_s5 }
   0x2   :  { %12 = vst [vmem:[#allocation3] sm:$0x1] %v11_v0 }
   0x3   :  { %13 = vsyncpa [#allocation5], 0 }
   0x4   :  { %14 = vsyncpa [#allocation7], 0  ;;  %s3864_s23 = smov [#allocation6]   ;;  %s3794_s27 = scalar_lea.hbm %s4859_s1, 4096 }
   0x5   :  { %s32_s24 = sshll.u32 %s3864_s23, 4  ;;  %p3795_p0 = scmp.ne.s32.totalorder %s4859_s1, %s3794_s27  ;;  %s33_s24 = int_to_ptr.vmem [resolvable:$true] %s32_s24 }
   0x6   :  { %p3798_p1 = scmp.lt.u32.totalorder %s3794_s27, %s4859_s1 }
   0x8   :  { %p3800_p2 = pnand %p3798_p1, %p3795_p0 }
   0xa   :  { %3803 = shalt.err (!%p3800_p2)
}
   0xb   :  { %s3804_s5 = scalar_lea.vmem %s33_s24, 4096  ;;  %p3809_p4 = scmp.lt.s32.totalorder %s33_s24, %s33_s24 }
   0xc   :  { %p3805_p3 = scmp.ne.s32.totalorder %s33_s24, %s3804_s5  ;;  %p3810_p5 = scmp.lt.s32.totalorder %s3804_s5, %s3804_s5 }
   0xe   :  { %p3811_p6 = por %p3810_p5, %p3809_p4 }
  0x10   :  { %p3812_p7 = pnand %p3811_p6, %p3805_p3 }
  0x12   :  { %3815 = shalt.err (!%p3812_p7)
}
  0x13   :  { %s3865_s8 = smov 256   ;;  %s3866_s9 = smov 16  }
  0x14   :  { %38 = dma.hbm_to_vmem [thread:$0]  %s4859_s1, 4096, %s33_s24, [#allocation7], %s3865_s8, %s3865_s8, %s3866_s9  }
  0x15   :  { %s3867_s12 = smov [#allocation4]   ;;  %s3816_s16 = scalar_lea.hbm %s4858_s0, 512 }
  0x16   :  { %s20_s13 = sshll.u32 %s3867_s12, 4  ;;  %p3817_p8 = scmp.ne.s32.totalorder %s4858_s0, %s3816_s16  ;;  %s21_s13 = int_to_ptr.vmem [resolvable:$true] %s20_s13 }
  0x17   :  { %p3820_p9 = scmp.lt.u32.totalorder %s3816_s16, %s4858_s0 }
  0x19   :  { %p3822_p10 = pnand %p3820_p9, %p3817_p8 }
  0x1b   :  { %3825 = shalt.err (!%p3822_p10)
}
  0x1c   :  { %s3826_s21 = scalar_lea.vmem %s21_s13, 512  ;;  %p3831_p12 = scmp.lt.s32.totalorder %s21_s13, %s21_s13 }
  0x1d   :  { %p3827_p11 = scmp.ne.s32.totalorder %s21_s13, %s3826_s21  ;;  %p3832_p13 = scmp.lt.s32.totalorder %s3826_s21, %s3826_s21 }
  0x1f   :  { %p3833_p0 = por %p3832_p13, %p3831_p12 }
  0x21   :  { %p3834_p1 = pnand %p3833_p0, %p3827_p11 }
  0x23   :  { %3837 = shalt.err (!%p3834_p1)
}
  0x24   :  { %s3868_s1 = smov 64   ;;  %s3869_s22 = smov 4  }
  0x25   :  { %26 = dma.hbm_to_vmem [thread:$0]  %s4858_s0, 512, %s21_s13, [#allocation5], %s3868_s1, %s3868_s1, %s3869_s22  }
  0x26   :  { %s3870_s25 = smov [#allocation8]   ;;  %s3838_s29 = scalar_lea.hbm %s4860_s2, 4096 }
  0x27   :  { %s44_s26 = sshll.u32 %s3870_s25, 4  ;;  %p3839_p2 = scmp.ne.s32.totalorder %s4860_s2, %s3838_s29  ;;  %s45_s26 = int_to_ptr.vmem [resolvable:$true] %s44_s26 }
  0x28   :  { %p3842_p3 = scmp.lt.u32.totalorder %s3838_s29, %s4860_s2 }
  0x2a   :  { %p3844_p4 = pnand %p3842_p3, %p3839_p2 }
  0x2c   :  { %3847 = shalt.err (!%p3844_p4)
}
  0x2d   :  { %s3848_s11 = scalar_lea.vmem %s45_s26, 4096  ;;  %p3853_p6 = scmp.lt.s32.totalorder %s45_s26, %s45_s26 }
  0x2e   :  { %p3849_p5 = scmp.ne.s32.totalorder %s45_s26, %s3848_s11  ;;  %p3854_p7 = scmp.lt.s32.totalorder %s3848_s11, %s3848_s11 }
  0x30   :  { %p3855_p8 = por %p3854_p7, %p3853_p6 }
  0x32   :  { %p3856_p9 = pnand %p3855_p8, %p3849_p5 }
  0x34   :  { %3859 = shalt.err (!%p3856_p9)
}
  0x35   :  { %50 = dma.hbm_to_vmem [thread:$0]  %s4860_s2, 4096, %s45_s26, [#allocation7], %s3865_s8, %s3865_s8, %s3866_s9  }
  0x36   :  { %3860 = dma.done.wait [#allocation5], 512  }
  0x37   :  { %3861 = vsyncadd [#allocation5], 4294966784 }
  0x38   :  { %3862 = dma.done.wait [#allocation7], 8192  }
  0x39   :  { %3863 = vsyncadd [#allocation7], 4294959104  ;;  %v3871_v1 = vmov 0   ;;  %v3956_v2 = vld [vmem:[#allocation6 + $0x4] ss:$16 sps:$4 sm:$0xff]   ;;  %v4865_v38 = vmov 0.0  }
  0x3a   :  { %314 = vmatprep.mubr.bf16.mxu0 %v3871_v1  ;;  %355 = vmatprep.mubr.bf16.mxu1 %v3871_v1  ;;  %v3958_v3 = vld [vmem:[#allocation6 + $0xc] ss:$16 sps:$4 sm:$0xff]   ;;  %v3961_v4 = vld [vmem:[#allocation6] ss:$16 sps:$4 sm:$0xff]   ;;  %v3963_v5 = vld [vmem:[#allocation6 + $0x8] ss:$16 sps:$4 sm:$0xff]  }
  0x3b   :  { %282 = vmatprep.subr.bf16.mxu0 %v3956_v2  ;;  %323 = vmatprep.subr.bf16.mxu1 %v3958_v3  ;;  %v3966_v6 = vld [vmem:[#allocation6 + $0x24] ss:$16 sps:$4 sm:$0xff]   ;;  %v3606_v7 = vld [vmem:[#allocation6 + $0x2c] ss:$16 sps:$4 sm:$0xff]   ;;  %v3970_v8 = vld [vmem:[#allocation6 + $0x20] ss:$16 sps:$4 sm:$0xff]  }
  0x3c   :  { %283 = vmatpush1.bf16.msra.mxu0 %v3961_v4  ;;  %324 = vmatpush1.bf16.msra.mxu1 %v3963_v5  ;;  %v3973_v9 = vld [vmem:[#allocation6 + $0x28] ss:$16 sps:$4 sm:$0xff]   ;;  %v3610_v10 = vld [vmem:[#allocation6 + $0x44] ss:$16 sps:$4 sm:$0xff]   ;;  %v3612_v11 = vld [vmem:[#allocation6 + $0x4c] ss:$16 sps:$4 sm:$0xff]  }
  0x3d   :  { %284 = vmatprep.subr.bf16.mxu0 %v3966_v6  ;;  %325 = vmatprep.subr.bf16.mxu1 %v3606_v7  ;;  %v3614_v12 = vld [vmem:[#allocation6 + $0x40] ss:$16 sps:$4 sm:$0xff]   ;;  %v3615_v13 = vld [vmem:[#allocation6 + $0x48] ss:$16 sps:$4 sm:$0xff]   ;;  %v3616_v14 = vld [vmem:[#allocation6 + $0x64] ss:$16 sps:$4 sm:$0xff]  }
  0x3e   :  { %v3618_v15 = vld [vmem:[#allocation6 + $0x6c] ss:$16 sps:$4 sm:$0xff]   ;;  %v3620_v16 = vld [vmem:[#allocation6 + $0x60] ss:$16 sps:$4 sm:$0xff]   ;;  %v3621_v17 = vld [vmem:[#allocation6 + $0x68] ss:$16 sps:$4 sm:$0xff]  }
  0x3f   :  { %v3622_v18 = vld [vmem:[#allocation6 + $0x84] ss:$16 sps:$4 sm:$0xff]   ;;  %v3624_v19 = vld [vmem:[#allocation6 + $0x8c] ss:$16 sps:$4 sm:$0xff]   ;;  %v3626_v20 = vld [vmem:[#allocation6 + $0x80] ss:$16 sps:$4 sm:$0xff]  }
  0x40   :  { %285 = vmatpush1.bf16.msra.mxu0 %v3970_v8  ;;  %326 = vmatpush1.bf16.msra.mxu1 %v3973_v9  ;;  %v3627_v21 = vld [vmem:[#allocation6 + $0x88] ss:$16 sps:$4 sm:$0xff]   ;;  %v3628_v22 = vld [vmem:[#allocation6 + $0xa4] ss:$16 sps:$4 sm:$0xff]   ;;  %v3630_v23 = vld [vmem:[#allocation6 + $0xac] ss:$16 sps:$4 sm:$0xff]  }
  0x41   :  { %286 = vmatprep.subr.bf16.mxu0 %v3610_v10  ;;  %327 = vmatprep.subr.bf16.mxu1 %v3612_v11  ;;  %v3632_v24 = vld [vmem:[#allocation6 + $0xa0] ss:$16 sps:$4 sm:$0xff]   ;;  %v3633_v25 = vld [vmem:[#allocation6 + $0xa8] ss:$16 sps:$4 sm:$0xff]   ;;  %v3634_v26 = vld [vmem:[#allocation6 + $0xc4] ss:$16 sps:$4 sm:$0xff]  }
  0x42   :  { %v3636_v27 = vld [vmem:[#allocation6 + $0xcc] ss:$16 sps:$4 sm:$0xff]   ;;  %v3638_v28 = vld [vmem:[#allocation6 + $0xc0] ss:$16 sps:$4 sm:$0xff]   ;;  %v3639_v29 = vld [vmem:[#allocation6 + $0xc8] ss:$16 sps:$4 sm:$0xff]  }
  0x43   :  { %v3640_v30 = vld [vmem:[#allocation6 + $0xe4] ss:$16 sps:$4 sm:$0xff]   ;;  %v3642_v31 = vld [vmem:[#allocation6 + $0xec] ss:$16 sps:$4 sm:$0xff]   ;;  %v3644_v32 = vld [vmem:[#allocation6 + $0xe0] ss:$16 sps:$4 sm:$0xff]  }
  0x44   :  { %287 = vmatpush1.bf16.msra.mxu0 %v3614_v12  ;;  %328 = vmatpush1.bf16.msra.mxu1 %v3615_v13  ;;  %v3645_v33 = vld [vmem:[#allocation6 + $0xe8] ss:$16 sps:$4 sm:$0xff]   ;;  %v67_v34 = vld [vmem:[#allocation4] sm:$0xf]  ;;  %v3988_v37 = vld [vmem:[#allocation8 + $0x4] ss:$16 sps:$4 sm:$0xff]  }
  0x45   :  { %288 = vmatprep.subr.bf16.mxu0 %v3616_v14  ;;  %329 = vmatprep.subr.bf16.mxu1 %v3618_v15  ;;  %v3646_v35 = vld [vmem:[#allocation4 + $0x4] sm:$0xff]   ;;  %v3986_v36 = vld [vmem:[#allocation8] ss:$16 sps:$4 sm:$0xff]   ;;  %v3656_v46 = vld [vmem:[#allocation4 + $0x14] sm:$0xff]   ;;  %vm3873_vm0 = vmmov 0   ;;  %vm2550_vm1 = vcmask 7168  }
  0x46   :  { %v3994_v39 = vld [vmem:[#allocation8 + $0x20] ss:$16 sps:$4 sm:$0xff]   ;;  %v3996_v40 = vld [vmem:[#allocation8 + $0x24] ss:$16 sps:$4 sm:$0xff]   ;;  %v3661_v51 = vld [vmem:[#allocation4 + $0x1c] ss:$0 sps:$4 sm:$0xff]  }
  0x47   :  { %v3651_v41 = vld [vmem:[#allocation4 + $0xc] sm:$0xff]   ;;  %v4006_v43 = vld [vmem:[#allocation8 + $0x44] ss:$16 sps:$4 sm:$0xff]   ;;  %v4060_v56 = vld [vmem:[#allocation8 + $0x8] ss:$16 sps:$4 sm:$0xff]  }
  0x48   :  { %289 = vmatpush1.bf16.msra.mxu0 %v3620_v16  ;;  %330 = vmatpush1.bf16.msra.mxu1 %v3621_v17  ;;  %v4004_v42 = vld [vmem:[#allocation8 + $0x40] ss:$16 sps:$4 sm:$0xff]   ;;  %v4014_v45 = vld [vmem:[#allocation8 + $0x64] ss:$16 sps:$4 sm:$0xff]   ;;  %v4062_v57 = vld [vmem:[#allocation8 + $0xc] ss:$16 sps:$4 sm:$0xff]  }
  0x49   :  { %290 = vmatprep.subr.bf16.mxu0 %v3622_v18  ;;  %331 = vmatprep.subr.bf16.mxu1 %v3624_v19  ;;  %v4012_v44 = vld [vmem:[#allocation8 + $0x60] ss:$16 sps:$4 sm:$0xff]   ;;  %v4024_v48 = vld [vmem:[#allocation8 + $0x84] ss:$16 sps:$4 sm:$0xff]   ;;  %v4070_v58 = vld [vmem:[#allocation8 + $0x28] ss:$16 sps:$4 sm:$0xff]  }
  0x4a   :  { %v4022_v47 = vld [vmem:[#allocation8 + $0x80] ss:$16 sps:$4 sm:$0xff]   ;;  %v4032_v50 = vld [vmem:[#allocation8 + $0xa4] ss:$16 sps:$4 sm:$0xff]   ;;  %v4072_v59 = vld [vmem:[#allocation8 + $0x2c] ss:$16 sps:$4 sm:$0xff]  }
  0x4b   :  { %v4030_v49 = vld [vmem:[#allocation8 + $0xa0] ss:$16 sps:$4 sm:$0xff]   ;;  %v4042_v53 = vld [vmem:[#allocation8 + $0xc4] ss:$16 sps:$4 sm:$0xff]   ;;  %v4082_v60 = vld [vmem:[#allocation8 + $0x48] ss:$16 sps:$4 sm:$0xff]  }
  0x4c   :  { %291 = vmatpush1.bf16.msra.mxu0 %v3626_v20  ;;  %332 = vmatpush1.bf16.msra.mxu1 %v3627_v21  ;;  %v4040_v52 = vld [vmem:[#allocation8 + $0xc0] ss:$16 sps:$4 sm:$0xff]   ;;  %v4050_v55 = vld [vmem:[#allocation8 + $0xe4] ss:$16 sps:$4 sm:$0xff]   ;;  %v4084_v61 = vld [vmem:[#allocation8 + $0x4c] ss:$16 sps:$4 sm:$0xff]  }
  0x4d   :  { %292 = vmatprep.subr.bf16.mxu0 %v3628_v22  ;;  %333 = vmatprep.subr.bf16.mxu1 %v3630_v23  ;;  %v4048_v54 = vld [vmem:[#allocation8 + $0xe0] ss:$16 sps:$4 sm:$0xff]   ;;  %v4090_v62 = vld [vmem:[#allocation8 + $0x68] ss:$16 sps:$4 sm:$0xff]   ;;  %v4092_v63 = vld [vmem:[#allocation8 + $0x6c] ss:$16 sps:$4 sm:$0xff]  }
  0x4e   :  { %v4098_v0 = vld [vmem:[#allocation8 + $0x88] ss:$16 sps:$4 sm:$0xff]  }
  0x50   :  { %293 = vmatpush1.bf16.msra.mxu0 %v3632_v24  ;;  %334 = vmatpush1.bf16.msra.mxu1 %v3633_v25 }
  0x51   :  { %294 = vmatprep.subr.bf16.mxu0 %v3634_v26  ;;  %335 = vmatprep.subr.bf16.mxu1 %v3636_v27 }
  0x54   :  { %295 = vmatpush1.bf16.msra.mxu0 %v3638_v28  ;;  %336 = vmatpush1.bf16.msra.mxu1 %v3639_v29 }
  0x55   :  { %296 = vmatprep.subr.bf16.mxu0 %v3640_v30  ;;  %337 = vmatprep.subr.bf16.mxu1 %v3642_v31 }
  0x58   :  { %297 = vmatpush1.bf16.msra.mxu0 %v3644_v32  ;;  %338 = vmatpush1.bf16.msra.mxu1 %v3645_v33 }
  0x59   :  { %611 = vmatprep.subr.bf16.mxu0 %v3956_v2  ;;  %682 = vmatprep.subr.bf16.mxu1 %v3958_v3  ;;  %v4100_v2 = vld [vmem:[#allocation8 + $0x8c] ss:$16 sps:$4 sm:$0xff]   ;;  %v4106_v3 = vld [vmem:[#allocation8 + $0xa8] ss:$16 sps:$4 sm:$0xff]  }
  0x5b   :  { %315 = vmatmul.mubr.bf16.vlgmr.msra.gmra.mrb[0].mxu0 %v67_v34  ;;  %356 = vmatmul.mubr.bf16.vlgmr.msra.gmra.mrb[0].mxu1 %v67_v34 }
  0x5c   :  { %612 = vmatpush1.bf16.msra.mxu0 %v3961_v4  ;;  %683 = vmatpush1.bf16.msra.mxu1 %v3963_v5  ;;  %v4108_v4 = vld [vmem:[#allocation8 + $0xac] ss:$16 sps:$4 sm:$0xff]   ;;  %v4114_v5 = vld [vmem:[#allocation8 + $0xc8] ss:$16 sps:$4 sm:$0xff]  }
  0x5d   :  { %613 = vmatprep.subr.bf16.mxu0 %v3966_v6  ;;  %684 = vmatprep.subr.bf16.mxu1 %v3606_v7  ;;  %v4116_v6 = vld [vmem:[#allocation8 + $0xcc] ss:$16 sps:$4 sm:$0xff]   ;;  %v4122_v7 = vld [vmem:[#allocation8 + $0xe8] ss:$16 sps:$4 sm:$0xff]  }
  0x5e   :  { %643 = vmatprep.mubr.bf16.mxu0 %v3871_v1  ;;  %714 = vmatprep.mubr.bf16.mxu1 %v3871_v1 }
  0x60   :  { %614 = vmatpush1.bf16.msra.mxu0 %v3970_v8  ;;  %685 = vmatpush1.bf16.msra.mxu1 %v3973_v9  ;;  %v4124_v8 = vld [vmem:[#allocation8 + $0xec] ss:$16 sps:$4 sm:$0xff]  }
  0x61   :  { %615 = vmatprep.subr.bf16.mxu0 %v3610_v10  ;;  %686 = vmatprep.subr.bf16.mxu1 %v3612_v11 }
  0x64   :  { %616 = vmatpush1.bf16.msra.mxu0 %v3614_v12  ;;  %687 = vmatpush1.bf16.msra.mxu1 %v3615_v13 }
  0x65   :  { %617 = vmatprep.subr.bf16.mxu0 %v3616_v14  ;;  %688 = vmatprep.subr.bf16.mxu1 %v3618_v15 }
  0x68   :  { %618 = vmatpush1.bf16.msra.mxu0 %v3620_v16  ;;  %689 = vmatpush1.bf16.msra.mxu1 %v3621_v17  ;;  %v102_v16 = vlaneseq }
  0x69   :  { %619 = vmatprep.subr.bf16.mxu0 %v3622_v18  ;;  %690 = vmatprep.subr.bf16.mxu1 %v3624_v19  ;;  %v407_v18 = vld [vmem:[%s4861_s3] sm:$0xf] }
  0x6a   :  { %v4178_v17 = vshrl.u32 %v102_v16, 7 }
  0x6c   :  { %620 = vmatpush1.bf16.msra.mxu0 %v3626_v20  ;;  %691 = vmatpush1.bf16.msra.mxu1 %v3627_v21  ;;  %v4870_v19 = vsub.s32 0, %v4178_v17  ;;  %v4868_v20 = vsub.s32 2, %v4178_v17  ;;  %v4869_v21 = vsub.s32 1, %v4178_v17 }
  0x6d   :  { %621 = vmatprep.subr.bf16.mxu0 %v3628_v22  ;;  %692 = vmatprep.subr.bf16.mxu1 %v3630_v23  ;;  %v4867_v22 = vsub.s32 3, %v4178_v17 }
  0x6e   :  { %v412_v23 = vrot.slane %v407_v18, %v4870_v19 }
  0x70   :  { %622 = vmatpush1.bf16.msra.mxu0 %v3632_v24  ;;  %693 = vmatpush1.bf16.msra.mxu1 %v3633_v25  ;;  %v420_v24 = vrot.slane %v407_v18, %v4868_v20  ;;  %v416_v25 = vrot.slane %v407_v18, %v4869_v21 }
  0x71   :  { %623 = vmatprep.subr.bf16.mxu0 %v3634_v26  ;;  %694 = vmatprep.subr.bf16.mxu1 %v3636_v27  ;;  %v424_v26 = vrot.slane %v407_v18, %v4867_v22 }
  0x74   :  { %624 = vmatpush1.bf16.msra.mxu0 %v3638_v28  ;;  %695 = vmatpush1.bf16.msra.mxu1 %v3639_v29 }
  0x75   :  { %625 = vmatprep.subr.bf16.mxu0 %v3640_v30  ;;  %696 = vmatprep.subr.bf16.mxu1 %v3642_v31 }
  0x78   :  { %626 = vmatpush1.bf16.msra.mxu0 %v3644_v32  ;;  %697 = vmatpush1.bf16.msra.mxu1 %v3645_v33 }
  0x79   :  { %2948 = vmatprep.subr.bf16.mxu0 %v4865_v38  ;;  %2968 = vmatprep.subr.bf16.mxu1 %v4865_v38 }
  0x7b   :  { %644 = vmatmul.mubr.bf16.vlgmr.msra.gmra.mrb[4].mxu0 %v3646_v35  ;;  %715 = vmatmul.mubr.bf16.vlgmr.msra.gmra.mrb[4].mxu1 %v3646_v35 }
  0x7c   :  { %2949 = vmatpush3.bf16.msra.mxu0 %v3986_v36  ;;  %2969 = vmatpush3.bf16.msra.mxu1 %v3988_v37 }
  0x7d   :  { %2950 = vmatprep.subr.bf16.mxu0 %v4865_v38  ;;  %2970 = vmatprep.subr.bf16.mxu1 %v4865_v38 }
  0x7e   :  { %653 = vmatprep.mubr.bf16.mxu0 %v3871_v1  ;;  %724 = vmatprep.mubr.bf16.mxu1 %v3871_v1 }
  0x80   :  { %2951 = vmatpush3.bf16.msra.mxu0 %v3994_v39  ;;  %2971 = vmatpush3.bf16.msra.mxu1 %v3996_v40 }
  0x81   :  { %2952 = vmatprep.subr.bf16.mxu0 %v4865_v38  ;;  %2972 = vmatprep.subr.bf16.mxu1 %v4865_v38 }
  0x83   :  { %654 = vmatmul.mubr.bf16.gmra.mrb[8].mxu0 %v3651_v41  ;;  %725 = vmatmul.mubr.bf16.gmra.mrb[8].mxu1 %v3651_v41 }
  0x84   :  { %2953 = vmatpush3.bf16.msra.mxu0 %v4004_v42  ;;  %2973 = vmatpush3.bf16.msra.mxu1 %v4006_v43 }
  0x85   :  { %2954 = vmatprep.subr.bf16.mxu0 %v4865_v38  ;;  %2974 = vmatprep.subr.bf16.mxu1 %v4865_v38 }
  0x86   :  { %663 = vmatprep.mubr.bf16.mxu0 %v3871_v1  ;;  %734 = vmatprep.mubr.bf16.mxu1 %v3871_v1 }
  0x88   :  { %2955 = vmatpush3.bf16.msra.mxu0 %v4012_v44  ;;  %2975 = vmatpush3.bf16.msra.mxu1 %v4014_v45 }
  0x89   :  { %2956 = vmatprep.subr.bf16.mxu0 %v4865_v38  ;;  %2976 = vmatprep.subr.bf16.mxu1 %v4865_v38 }
  0x8b   :  { %664 = vmatmul.mubr.bf16.gmra.mrb[12].mxu0 %v3656_v46  ;;  %735 = vmatmul.mubr.bf16.gmra.mrb[12].mxu1 %v3656_v46 }
  0x8c   :  { %2957 = vmatpush3.bf16.msra.mxu0 %v4022_v47  ;;  %2977 = vmatpush3.bf16.msra.mxu1 %v4024_v48 }
  0x8d   :  { %2958 = vmatprep.subr.bf16.mxu0 %v4865_v38  ;;  %2978 = vmatprep.subr.bf16.mxu1 %v4865_v38 }
  0x8e   :  { %673 = vmatprep.mubr.bf16.mxu0 %v3871_v1  ;;  %744 = vmatprep.mubr.bf16.mxu1 %v3871_v1 }
  0x90   :  { %2959 = vmatpush3.bf16.msra.mxu0 %v4030_v49  ;;  %2979 = vmatpush3.bf16.msra.mxu1 %v4032_v50 }
  0x91   :  { %2960 = vmatprep.subr.bf16.mxu0 %v4865_v38  ;;  %2980 = vmatprep.subr.bf16.mxu1 %v4865_v38 }
  0x93   :  { %674 = vmatmul.mubr.bf16.gmra.mrb[16].mxu0 %v3661_v51  ;;  %745 = vmatmul.mubr.bf16.gmra.mrb[16].mxu1 %v3661_v51 }
  0x94   :  { %2961 = vmatpush3.bf16.msra.mxu0 %v4040_v52  ;;  %2981 = vmatpush3.bf16.msra.mxu1 %v4042_v53 }
  0x95   :  { %2962 = vmatprep.subr.bf16.mxu0 %v4865_v38  ;;  %2982 = vmatprep.subr.bf16.mxu1 %v4865_v38 }
  0x96   :  { %2964 = vmatprep.mubr.msk.bf16.mxu0 %vm3873_vm0, %v4865_v38  ;;  %2984 = vmatprep.mubr.msk.bf16.mxu1 %vm3873_vm0, %v4865_v38 }
  0x98   :  { %2963 = vmatpush3.bf16.msra.mxu0 %v4048_v54  ;;  %2983 = vmatpush3.bf16.msra.mxu1 %v4050_v55 }
  0x99   :  { %2988 = vmatprep.subr.bf16.mxu0 %v4865_v38  ;;  %3008 = vmatprep.subr.bf16.mxu1 %v4865_v38 }
  0x9b   :  { %2965 = vmatmul.mubr.bf16.vlgmr.msra.gmra.mrb[20].mxu0 %v3871_v1  ;;  %2985 = vmatmul.mubr.bf16.vlgmr.msra.gmra.mrb[20].mxu1 %v3871_v1 }
  0x9c   :  { %2989 = vmatpush3.bf16.msra.mxu0 %v4060_v56  ;;  %3009 = vmatpush3.bf16.msra.mxu1 %v4062_v57 }
  0x9d   :  { %2990 = vmatprep.subr.bf16.mxu0 %v4865_v38  ;;  %3010 = vmatprep.subr.bf16.mxu1 %v4865_v38 }
  0x9e   :  { %3004 = vmatprep.mubr.msk.bf16.mxu0 %vm3873_vm0, %v4865_v38  ;;  %3024 = vmatprep.mubr.msk.bf16.mxu1 %vm3873_vm0, %v4865_v38 }
  0xa0   :  { %2991 = vmatpush3.bf16.msra.mxu0 %v4070_v58  ;;  %3011 = vmatpush3.bf16.msra.mxu1 %v4072_v59 }
  0xa1   :  { %2992 = vmatprep.subr.bf16.mxu0 %v4865_v38  ;;  %3012 = vmatprep.subr.bf16.mxu1 %v4865_v38 }
  0xa4   :  { %2993 = vmatpush3.bf16.msra.mxu0 %v4082_v60  ;;  %3013 = vmatpush3.bf16.msra.mxu1 %v4084_v61 }
  0xa5   :  { %2994 = vmatprep.subr.bf16.mxu0 %v4865_v38  ;;  %3014 = vmatprep.subr.bf16.mxu1 %v4865_v38 }
  0xa8   :  { %2995 = vmatpush3.bf16.msra.mxu0 %v4090_v62  ;;  %3015 = vmatpush3.bf16.msra.mxu1 %v4092_v63 }
  0xa9   :  { %2996 = vmatprep.subr.bf16.mxu0 %v4865_v38  ;;  %3016 = vmatprep.subr.bf16.mxu1 %v4865_v38 }
  0xac   :  { %2997 = vmatpush3.bf16.msra.mxu0 %v4098_v0  ;;  %3017 = vmatpush3.bf16.msra.mxu1 %v4100_v2 }
  0xad   :  { %2998 = vmatprep.subr.bf16.mxu0 %v4865_v38  ;;  %3018 = vmatprep.subr.bf16.mxu1 %v4865_v38 }
  0xb0   :  { %2999 = vmatpush3.bf16.msra.mxu0 %v4106_v3  ;;  %3019 = vmatpush3.bf16.msra.mxu1 %v4108_v4 }
  0xb1   :  { %3000 = vmatprep.subr.bf16.mxu0 %v4865_v38  ;;  %3020 = vmatprep.subr.bf16.mxu1 %v4865_v38 }
  0xb4   :  { %3001 = vmatpush3.bf16.msra.mxu0 %v4114_v5  ;;  %3021 = vmatpush3.bf16.msra.mxu1 %v4116_v6 }
  0xb5   :  { %3002 = vmatprep.subr.bf16.mxu0 %v4865_v38  ;;  %3022 = vmatprep.subr.bf16.mxu1 %v4865_v38 }
  0xb8   :  { %3003 = vmatpush3.bf16.msra.mxu0 %v4122_v7  ;;  %3023 = vmatpush3.bf16.msra.mxu1 %v4124_v8 }
  0xb9   :  { %3028 = vmatprep.subr.bf16.mxu0 %v4865_v38  ;;  %3048 = vmatprep.subr.bf16.mxu1 %v4865_v38 }
  0xbb   :  { %3005 = vmatmul.mubr.bf16.vlgmr.msra.gmra.mrb[24].mxu0 %v3871_v1  ;;  %3025 = vmatmul.mubr.bf16.vlgmr.msra.gmra.mrb[24].mxu1 %v3871_v1 }
  0xbc   :  { %3029 = vmatpush3.bf16.msra.mxu0 %v3986_v36  ;;  %3049 = vmatpush3.bf16.msra.mxu1 %v3988_v37 }
  0xbd   :  { %3030 = vmatprep.subr.bf16.mxu0 %v4865_v38  ;;  %3050 = vmatprep.subr.bf16.mxu1 %v4865_v38 }
  0xbe   :  { %3044 = vmatprep.mubr.msk.bf16.mxu0 %vm3873_vm0, %v4865_v38  ;;  %3064 = vmatprep.mubr.msk.bf16.mxu1 %vm3873_vm0, %v4865_v38 }
  0xc0   :  { %3031 = vmatpush3.bf16.msra.mxu0 %v3994_v39  ;;  %3051 = vmatpush3.bf16.msra.mxu1 %v3996_v40 }
  0xc1   :  { %3032 = vmatprep.subr.bf16.mxu0 %v4865_v38  ;;  %3052 = vmatprep.subr.bf16.mxu1 %v4865_v38 }
  0xc4   :  { %3033 = vmatpush3.bf16.msra.mxu0 %v4004_v42  ;;  %3053 = vmatpush3.bf16.msra.mxu1 %v4006_v43 }
  0xc5   :  { %3034 = vmatprep.subr.bf16.mxu0 %v4865_v38  ;;  %3054 = vmatprep.subr.bf16.mxu1 %v4865_v38 }
  0xc8   :  { %3035 = vmatpush3.bf16.msra.mxu0 %v4012_v44  ;;  %3055 = vmatpush3.bf16.msra.mxu1 %v4014_v45 }
  0xc9   :  { %3036 = vmatprep.subr.bf16.mxu0 %v4865_v38  ;;  %3056 = vmatprep.subr.bf16.mxu1 %v4865_v38 }
  0xcc   :  { %3037 = vmatpush3.bf16.msra.mxu0 %v4022_v47  ;;  %3057 = vmatpush3.bf16.msra.mxu1 %v4024_v48 }
  0xcd   :  { %3038 = vmatprep.subr.bf16.mxu0 %v4865_v38  ;;  %3058 = vmatprep.subr.bf16.mxu1 %v4865_v38 }
  0xd0   :  { %3039 = vmatpush3.bf16.msra.mxu0 %v4030_v49  ;;  %3059 = vmatpush3.bf16.msra.mxu1 %v4032_v50 }
  0xd1   :  { %3040 = vmatprep.subr.bf16.mxu0 %v4865_v38  ;;  %3060 = vmatprep.subr.bf16.mxu1 %v4865_v38 }
  0xd4   :  { %3041 = vmatpush3.bf16.msra.mxu0 %v4040_v52  ;;  %3061 = vmatpush3.bf16.msra.mxu1 %v4042_v53 }
  0xd5   :  { %3042 = vmatprep.subr.bf16.mxu0 %v4865_v38  ;;  %3062 = vmatprep.subr.bf16.mxu1 %v4865_v38 }
  0xd8   :  { %3043 = vmatpush3.bf16.msra.mxu0 %v4048_v54  ;;  %3063 = vmatpush3.bf16.msra.mxu1 %v4050_v55 }
  0xd9   :  { %3068 = vmatprep.subr.bf16.mxu0 %v4865_v38  ;;  %3088 = vmatprep.subr.bf16.mxu1 %v4865_v38 }
 0x12e   :  { %v4170_v1 = vpop.f32.mrb[0].mxu0  ;;  %v4172_v9 = vpop.f32.mrb[0].mxu1 }
 0x12f   :  { %v4174_v10 = vpop.f32.mrb[1].mxu0  ;;  %v4176_v11 = vpop.f32.mrb[1].mxu1 }
 0x130   :  { %v320_v12 = vpop.f32.mrb[2].mxu0  ;;  %v361_v13 = vpop.f32.mrb[2].mxu1 }
 0x131   :  { %v321_v14 = vpop.f32.mrb[3].mxu0  ;;  %v362_v15 = vpop.f32.mrb[3].mxu1 }
 0x14e   :  { %v645_v27 = vpop.f32.mrb[4].mxu0  ;;  %v716_v28 = vpop.f32.mrb[4].mxu1 }
 0x14f   :  { %v4195_v29 = vadd.f32 %v645_v27, %v412_v23  ;;  %v647_v30 = vpop.f32.mrb[5].mxu0  ;;  %v4197_v31 = vadd.f32 %v716_v28, %v420_v24  ;;  %v718_v32 = vpop.f32.mrb[5].mxu1 }
 0x150   :  { %v4199_v33 = vadd.f32 %v647_v30, %v416_v25  ;;  %v649_v34 = vpop.f32.mrb[6].mxu0  ;;  %v4201_v35 = vadd.f32 %v718_v32, %v424_v26  ;;  %v720_v41 = vpop.f32.mrb[6].mxu1 }
 0x151   :  { %v4203_v46 = vadd.f32 %v649_v34, %v412_v23  ;;  %v651_v51 = vpop.f32.mrb[7].mxu0  ;;  %v4205_v12 = vadd.f32 %v720_v41, %v420_v24  ;;  %v722_v13 = vpop.f32.mrb[7].mxu1 }
 0x152   :  { %v4207_v14 = vadd.f32 %v651_v51, %v416_v25  ;;  %v4209_v15 = vadd.f32 %v722_v13, %v424_v26 }
 0x153   :  { %4871 = vst [vmem:[#allocation11_spill] sm:$0xff] %v4205_v12 }
 0x154   :  { %4872 = vst [vmem:[#allocation12_spill] sm:$0xff] %v4209_v15 }
 0x156   :  { %v655_v16 = vpop.f32.mrb[8].mxu0  ;;  %v726_v18 = vpop.f32.mrb[8].mxu1 }
 0x157   :  { %v4211_v27 = vadd.f32 %v655_v16, %v412_v23  ;;  %v657_v28 = vpop.f32.mrb[9].mxu0  ;;  %v4213_v30 = vadd.f32 %v726_v18, %v420_v24  ;;  %v728_v32 = vpop.f32.mrb[9].mxu1 }
 0x158   :  { %v4215_v38 = vadd.f32 %v657_v28, %v416_v25  ;;  %v659_v34 = vpop.f32.mrb[10].mxu0  ;;  %v4217_v22 = vadd.f32 %v728_v32, %v424_v26  ;;  %v730_v41 = vpop.f32.mrb[10].mxu1 }
 0x159   :  { %4873 = vst [vmem:[#allocation13_spill] sm:$0xff] %v4211_v27  ;;  %4874 = vst [vmem:[#allocation14_spill] sm:$0xff] %v4213_v30  ;;  %v4219_v20 = vadd.f32 %v659_v34, %v412_v23  ;;  %v661_v51 = vpop.f32.mrb[11].mxu0  ;;  %v4221_v21 = vadd.f32 %v730_v41, %v420_v24  ;;  %v732_v13 = vpop.f32.mrb[11].mxu1 }
 0x15a   :  { %4875 = vst [vmem:[#allocation15_spill] sm:$0xff] %v4215_v38  ;;  %4876 = vst [vmem:[#allocation16_spill] sm:$0xff] %v4217_v22  ;;  %v4223_v19 = vadd.f32 %v661_v51, %v416_v25  ;;  %v4225_v16 = vadd.f32 %v732_v13, %v424_v26 }
 0x15b   :  { %4877 = vst [vmem:[#allocation17_spill] sm:$0xff] %v4219_v20  ;;  %4878 = vst [vmem:[#allocation18_spill] sm:$0xff] %v4221_v21 }
 0x15c   :  { %4879 = vst [vmem:[#allocation19_spill] sm:$0xff] %v4223_v19  ;;  %4880 = vst [vmem:[#allocation20_spill] sm:$0xff] %v4225_v16 }
 0x15e   :  { %v665_v27 = vpop.f32.mrb[12].mxu0  ;;  %v736_v18 = vpop.f32.mrb[12].mxu1 }
 0x15f   :  { %v4227_v30 = vadd.f32 %v665_v27, %v412_v23  ;;  %v667_v28 = vpop.f32.mrb[13].mxu0  ;;  %v4229_v38 = vadd.f32 %v736_v18, %v420_v24  ;;  %v738_v32 = vpop.f32.mrb[13].mxu1  ;;  %v100_v18 = vld [vmem:[%s4861_s3] sm:$0xf] }
 0x160   :  { %v4231_v22 = vadd.f32 %v667_v28, %v416_v25  ;;  %v669_v34 = vpop.f32.mrb[14].mxu0  ;;  %v4233_v20 = vadd.f32 %v738_v32, %v424_v26  ;;  %v740_v41 = vpop.f32.mrb[14].mxu1 }
 0x161   :  { %4881 = vst [vmem:[#allocation21_spill] sm:$0xff] %v4227_v30  ;;  %4882 = vst [vmem:[#allocation22_spill] sm:$0xff] %v4229_v38  ;;  %v4235_v21 = vadd.f32 %v669_v34, %v412_v23  ;;  %v671_v51 = vpop.f32.mrb[15].mxu0  ;;  %v4237_v19 = vadd.f32 %v740_v41, %v420_v24  ;;  %v742_v13 = vpop.f32.mrb[15].mxu1 }
 0x162   :  { %4883 = vst [vmem:[#allocation23_spill] sm:$0xff] %v4231_v22  ;;  %4884 = vst [vmem:[#allocation24_spill] sm:$0xff] %v4233_v20  ;;  %v4239_v16 = vadd.f32 %v671_v51, %v416_v25  ;;  %v4241_v27 = vadd.f32 %v742_v13, %v424_v26  ;;  %v4892_v13 = vsub.s32 0, %v4178_v17 }
 0x163   :  { %4885 = vst [vmem:[#allocation25_spill] sm:$0xff] %v4235_v21  ;;  %4886 = vst [vmem:[#allocation26_spill] sm:$0xff] %v4237_v19 }
 0x164   :  { %4887 = vst [vmem:[#allocation27_spill] sm:$0xff] %v4239_v16  ;;  %4888 = vst [vmem:[#allocation28_spill] sm:$0xff] %v4241_v27  ;;  %v105_v27 = vrot.slane %v100_v18, %v4892_v13  ;;  %v4893_v16 = vsub.s32 1, %v4178_v17 }
 0x166   :  { %v675_v28 = vpop.f32.mrb[16].mxu0  ;;  %v746_v38 = vpop.f32.mrb[16].mxu1  ;;  %v109_v30 = vrot.slane %v100_v18, %v4893_v16 }
 0x167   :  { %v4246_v22 = vadd.f32 %v675_v28, %v412_v23  ;;  %v677_v32 = vpop.f32.mrb[17].mxu0  ;;  %v4248_v20 = vadd.f32 %v746_v38, %v420_v24  ;;  %v748_v34 = vpop.f32.mrb[17].mxu1  ;;  %v317_v23 = vadd.f32 %v4170_v1, %v105_v27  ;;  %v4895_v1 = vsub.s32 3, %v4178_v17 }
 0x168   :  { %v4250_v21 = vadd.f32 %v677_v32, %v416_v25  ;;  %v679_v41 = vpop.f32.mrb[18].mxu0  ;;  %v4252_v19 = vadd.f32 %v748_v34, %v424_v26  ;;  %v750_v51 = vpop.f32.mrb[18].mxu1  ;;  %v319_v38 = vadd.f32 %v4174_v10, %v109_v30 }
 0x169   :  { %4889 = vst [vmem:[#allocation29_spill] sm:$0xff] %v4248_v20  ;;  %v680_v15 = vpop.f32.mrb[19].mxu0  ;;  %v751_v12 = vpop.f32.mrb[19].mxu1  ;;  %v117_v16 = vrot.slane %v100_v18, %v4895_v1 }
 0x16a   :  { %4890 = vst [vmem:[#allocation30_spill] sm:$0xff] %v4250_v21  ;;  %4891 = vst [vmem:[#allocation31_spill] sm:$0xff] %v4252_v19  ;;  %v4894_v15 = vsub.s32 2, %v4178_v17 }
 0x16b   :  { %v360_v30 = vadd.f32 %v4176_v11, %v117_v16 }
 0x16c   :  { %v113_v12 = vrot.slane %v100_v18, %v4894_v15 }
 0x16e   :  { %v880_v24 = vpop.f32.mrb[20].mxu0  ;;  %v986_v28 = vpop.f32.mrb[20].mxu1  ;;  %v358_v10 = vadd.f32 %v4172_v9, %v113_v12 }
 0x16f   :  { %v886_v25 = vadd.f32 %v880_v24, %v317_v23  ;;  %v992_v32 = vadd.f32 %v986_v28, %v319_v38  ;;  %v2966_v41 = vpop.f32.mrb[21].mxu0  ;;  %v2986_v26 = vpop.f32.mrb[21].mxu1 }
 0x170   :  { %v883_v34 = vpop.f32.mrb[22].mxu0  ;;  %v989_v51 = vpop.f32.mrb[22].mxu1 }
 0x171   :  { %v2967_v19 = vpop.f32.mrb[23].mxu0  ;;  %v2987_v20 = vpop.f32.mrb[23].mxu1  ;;  %v1209_v13 = vmul.f32 0.5, %v992_v32  ;;  %v1205_v21 = vmul.f32 0.5, %v886_v25 }
 0x173   :  { %3682 = vtanh.f32 %v1209_v13 }
 0x174   :  { %3684 = vtanh.f32 %v1205_v21 }
 0x17d   :  { %v3683_v32 = vpop.eup %3682 }
 0x17e   :  { %v3685_v34 = vpop.eup %3684  ;;  %v1211_v17 = vmul.f32 0.5, %v3683_v32 }
 0x17f   :  { %v1207_v21 = vmul.f32 0.5, %v3685_v34 }
 0x180   :  { %v1212_v51 = vadd.f32 0.5, %v1211_v17 }
 0x181   :  { %v1208_v9 = vadd.f32 0.5, %v1207_v21 }
 0x182   :  { %v1218_v13 = vmul.f32 0.0, %v1212_v51 }
 0x18e   :  { %v1092_v27 = vpop.f32.mrb[24].mxu0  ;;  %v1198_v23 = vpop.f32.mrb[24].mxu1 }
 0x18f   :  { %v1098_v38 = vadd.f32 %v1092_v27, %v358_v10  ;;  %v1204_v24 = vadd.f32 %v1198_v23, %v360_v30  ;;  %v3006_v19 = vpop.f32.mrb[25].mxu0  ;;  %v3026_v20 = vpop.f32.mrb[25].mxu1 }
 0x190   :  { %v1095_v28 = vpop.f32.mrb[26].mxu0  ;;  %v1201_v25 = vpop.f32.mrb[26].mxu1 }
 0x191   :  { %3686 = vtanh.f32 %v1098_v38  ;;  %v3007_v41 = vpop.f32.mrb[27].mxu0  ;;  %v3027_v26 = vpop.f32.mrb[27].mxu1  ;;  %v1214_v18 = vmul.f32 0.5, %v1204_v24  ;;  %v4896_v38 = vmov 0.0  }
 0x193   :  { %3688 = vtanh.f32 %v1214_v18 }
 0x19b   :  { %v3687_v11 = vpop.eup %3686 }
 0x19c   :  { %v1219_v15 = vmul.f32 %v3687_v11, %v1208_v9 }
 0x19d   :  { %v3689_v1 = vpop.eup %3688 }
 0x19e   :  { %v4266_v12 = vadd.f32 %v1219_v15, %v1218_v13  ;;  %v1216_v16 = vmul.f32 0.5, %v3689_v1 }
 0x1a0   :  { %3690 = vtanh.f32 %v4266_v12  ;;  %v1217_v10 = vadd.f32 0.5, %v1216_v16 }
 0x1aa   :  { %v3691_v30 = vpop.eup %3690 }
 0x1ab   :  { %v1222_v27 = vmul.f32 %v3691_v30, %v1217_v10 }
 0x1ad   :  { %v1223_v23 = vpack.c.bf16 %v1222_v27, %v1222_v27 }
 0x1af   :  { %3045 = vmatmul.mubr.bf16.vlgmr.msra.gmra.mrb[28].mxu0 %v1223_v23  ;;  %3065 = vmatmul.mubr.bf16.vlgmr.msra.gmra.mrb[28].mxu1 %v1223_v23 }
 0x1b0   :  { %3069 = vmatpush3.bf16.msra.mxu0 %v4060_v56  ;;  %3089 = vmatpush3.bf16.msra.mxu1 %v4062_v57 }
 0x1b1   :  { %3070 = vmatprep.subr.bf16.mxu0 %v4896_v38  ;;  %3090 = vmatprep.subr.bf16.mxu1 %v4896_v38 }
 0x1b2   :  { %3084 = vmatprep.mubr.msk.bf16.mxu0 %vm3873_vm0, %v4896_v38  ;;  %3104 = vmatprep.mubr.msk.bf16.mxu1 %vm3873_vm0, %v4896_v38 }
 0x1b4   :  { %3071 = vmatpush3.bf16.msra.mxu0 %v4070_v58  ;;  %3091 = vmatpush3.bf16.msra.mxu1 %v4072_v59 }
 0x1b5   :  { %3072 = vmatprep.subr.bf16.mxu0 %v4896_v38  ;;  %3092 = vmatprep.subr.bf16.mxu1 %v4896_v38 }
 0x1b8   :  { %3073 = vmatpush3.bf16.msra.mxu0 %v4082_v60  ;;  %3093 = vmatpush3.bf16.msra.mxu1 %v4084_v61 }
 0x1b9   :  { %3074 = vmatprep.subr.bf16.mxu0 %v4896_v38  ;;  %3094 = vmatprep.subr.bf16.mxu1 %v4896_v38 }
 0x1bc   :  { %3075 = vmatpush3.bf16.msra.mxu0 %v4090_v62  ;;  %3095 = vmatpush3.bf16.msra.mxu1 %v4092_v63 }
 0x1bd   :  { %3076 = vmatprep.subr.bf16.mxu0 %v4896_v38  ;;  %3096 = vmatprep.subr.bf16.mxu1 %v4896_v38 }
 0x1c0   :  { %3077 = vmatpush3.bf16.msra.mxu0 %v4098_v0  ;;  %3097 = vmatpush3.bf16.msra.mxu1 %v4100_v2 }
 0x1c1   :  { %3078 = vmatprep.subr.bf16.mxu0 %v4896_v38  ;;  %3098 = vmatprep.subr.bf16.mxu1 %v4896_v38 }
 0x1c4   :  { %3079 = vmatpush3.bf16.msra.mxu0 %v4106_v3  ;;  %3099 = vmatpush3.bf16.msra.mxu1 %v4108_v4 }
 0x1c5   :  { %3080 = vmatprep.subr.bf16.mxu0 %v4896_v38  ;;  %3100 = vmatprep.subr.bf16.mxu1 %v4896_v38 }
 0x1c8   :  { %3081 = vmatpush3.bf16.msra.mxu0 %v4114_v5  ;;  %3101 = vmatpush3.bf16.msra.mxu1 %v4116_v6 }
 0x1c9   :  { %3082 = vmatprep.subr.bf16.mxu0 %v4896_v38  ;;  %3102 = vmatprep.subr.bf16.mxu1 %v4896_v38 }
 0x1cc   :  { %3083 = vmatpush3.bf16.msra.mxu0 %v4122_v7  ;;  %3103 = vmatpush3.bf16.msra.mxu1 %v4124_v8 }
 0x1cd   :  { %3108 = vmatprep.subr.bf16.mxu0 %v4896_v38  ;;  %3128 = vmatprep.subr.bf16.mxu1 %v4896_v38 }
 0x1cf   :  { %3085 = vmatmul.mubr.bf16.vlgmr.msra.gmra.mrb[32].mxu0 %v1223_v23  ;;  %3105 = vmatmul.mubr.bf16.vlgmr.msra.gmra.mrb[32].mxu1 %v1223_v23 }
 0x1d0   :  { %3109 = vmatpush3.bf16.msra.mxu0 %v3986_v36  ;;  %3129 = vmatpush3.bf16.msra.mxu1 %v3988_v37 }
 0x1d1   :  { %3110 = vmatprep.subr.bf16.mxu0 %v4896_v38  ;;  %3130 = vmatprep.subr.bf16.mxu1 %v4896_v38 }
 0x1d2   :  { %3124 = vmatprep.mubr.msk.bf16.mxu0 %vm3873_vm0, %v4896_v38  ;;  %3144 = vmatprep.mubr.msk.bf16.mxu1 %vm3873_vm0, %v4896_v38 }
 0x1d4   :  { %3111 = vmatpush3.bf16.msra.mxu0 %v3994_v39  ;;  %3131 = vmatpush3.bf16.msra.mxu1 %v3996_v40 }
 0x1d5   :  { %3112 = vmatprep.subr.bf16.mxu0 %v4896_v38  ;;  %3132 = vmatprep.subr.bf16.mxu1 %v4896_v38 }
 0x1d8   :  { %3113 = vmatpush3.bf16.msra.mxu0 %v4004_v42  ;;  %3133 = vmatpush3.bf16.msra.mxu1 %v4006_v43 }
 0x1d9   :  { %3114 = vmatprep.subr.bf16.mxu0 %v4896_v38  ;;  %3134 = vmatprep.subr.bf16.mxu1 %v4896_v38 }
 0x1dc   :  { %3115 = vmatpush3.bf16.msra.mxu0 %v4012_v44  ;;  %3135 = vmatpush3.bf16.msra.mxu1 %v4014_v45 }
 0x1dd   :  { %3116 = vmatprep.subr.bf16.mxu0 %v4896_v38  ;;  %3136 = vmatprep.subr.bf16.mxu1 %v4896_v38 }
 0x1e0   :  { %3117 = vmatpush3.bf16.msra.mxu0 %v4022_v47  ;;  %3137 = vmatpush3.bf16.msra.mxu1 %v4024_v48 }
 0x1e1   :  { %3118 = vmatprep.subr.bf16.mxu0 %v4896_v38  ;;  %3138 = vmatprep.subr.bf16.mxu1 %v4896_v38 }
 0x1e4   :  { %3119 = vmatpush3.bf16.msra.mxu0 %v4030_v49  ;;  %3139 = vmatpush3.bf16.msra.mxu1 %v4032_v50 }
 0x1e5   :  { %3120 = vmatprep.subr.bf16.mxu0 %v4896_v38  ;;  %3140 = vmatprep.subr.bf16.mxu1 %v4896_v38 }
 0x1e8   :  { %3121 = vmatpush3.bf16.msra.mxu0 %v4040_v52  ;;  %3141 = vmatpush3.bf16.msra.mxu1 %v4042_v53 }
 0x1e9   :  { %3122 = vmatprep.subr.bf16.mxu0 %v4896_v38  ;;  %3142 = vmatprep.subr.bf16.mxu1 %v4896_v38 }
 0x1ec   :  { %3123 = vmatpush3.bf16.msra.mxu0 %v4048_v54  ;;  %3143 = vmatpush3.bf16.msra.mxu1 %v4050_v55 }
 0x1ed   :  { %3148 = vmatprep.subr.bf16.mxu0 %v4896_v38  ;;  %3168 = vmatprep.subr.bf16.mxu1 %v4896_v38 }
 0x282   :  { %v1259_v24 = vpop.f32.mrb[28].mxu0  ;;  %v1301_v19 = vpop.f32.mrb[28].mxu1 }
 0x283   :  { %v1265_v20 = vadd.f32 %v1259_v24, %v4195_v29  ;;  %v1307_v28 = vadd.f32 %v1301_v19, %v4199_v33  ;;  %v3046_v25 = vpop.f32.mrb[29].mxu0  ;;  %v3066_v32 = vpop.f32.mrb[29].mxu1 }
 0x284   :  { %v1262_v41 = vpop.f32.mrb[30].mxu0  ;;  %v1304_v26 = vpop.f32.mrb[30].mxu1 }
 0x285   :  { %v3047_v34 = vpop.f32.mrb[31].mxu0  ;;  %v3067_v17 = vpop.f32.mrb[31].mxu1  ;;  %v1396_v18 = vmul.f32 0.5, %v1307_v28  ;;  %v1392_v21 = vmul.f32 0.5, %v1265_v20 }
 0x287   :  { %3692 = vtanh.f32 %v1396_v18 }
 0x288   :  { %3694 = vtanh.f32 %v1392_v21 }
 0x291   :  { %v3693_v16 = vpop.eup %3692 }
 0x292   :  { %v3695_v27 = vpop.eup %3694  ;;  %v1398_v23 = vmul.f32 0.5, %v3693_v16 }
 0x293   :  { %v1394_v19 = vmul.f32 0.5, %v3695_v27 }
 0x294   :  { %v1399_v20 = vadd.f32 0.5, %v1398_v23 }
 0x295   :  { %v1395_v28 = vadd.f32 0.5, %v1394_v19 }
 0x2a2   :  { %v1343_v51 = vpop.f32.mrb[32].mxu0  ;;  %v1385_v9 = vpop.f32.mrb[32].mxu1 }
 0x2a3   :  { %v1349_v11 = vadd.f32 %v1343_v51, %v4197_v31  ;;  %v1391_v13 = vadd.f32 %v1385_v9, %v4201_v35  ;;  %v3086_v15 = vpop.f32.mrb[33].mxu0  ;;  %v3106_v29 = vpop.f32.mrb[33].mxu1  ;;  %v1405_v31 = vmul.f32 %v1399_v20, %v4266_v12  ;;  %v4898_v12 = vld [vmem:[#allocation12_spill] sm:$0xff] }
 0x2a4   :  { %v1346_v1 = vpop.f32.mrb[34].mxu0  ;;  %v1388_v33 = vpop.f32.mrb[34].mxu1 }
 0x2a5   :  { %3696 = vtanh.f32 %v1349_v11  ;;  %v3087_v10 = vpop.f32.mrb[35].mxu0  ;;  %v3107_v30 = vpop.f32.mrb[35].mxu1  ;;  %v1401_v24 = vmul.f32 0.5, %v1391_v13 }
 0x2a7   :  { %3698 = vtanh.f32 %v1401_v24 }
 0x2af   :  { %v3697_v25 = vpop.eup %3696 }
 0x2b0   :  { %v1406_v32 = vmul.f32 %v3697_v25, %v1395_v28 }
 0x2b1   :  { %v3699_v41 = vpop.eup %3698 }
 0x2b2   :  { %v4346_v35 = vadd.f32 %v1406_v32, %v1405_v31  ;;  %v1403_v26 = vmul.f32 0.5, %v3699_v41 }
 0x2b4   :  { %3700 = vtanh.f32 %v4346_v35  ;;  %v1404_v34 = vadd.f32 0.5, %v1403_v26 }
 0x2be   :  { %v3701_v17 = vpop.eup %3700 }
 0x2bf   :  { %v1409_v18 = vmul.f32 %v3701_v17, %v1404_v34  ;;  %v4899_v17 = vld [vmem:[#allocation13_spill] sm:$0xff] }
 0x2c1   :  { %v1410_v21 = vpack.c.bf16 %v1409_v18, %v1409_v18 }
 0x2c3   :  { %3125 = vmatmul.mubr.bf16.vlgmr.msra.gmra.mrb[36].mxu0 %v1410_v21  ;;  %3145 = vmatmul.mubr.bf16.vlgmr.msra.gmra.mrb[36].mxu1 %v1410_v21 }
 0x2c4   :  { %3149 = vmatpush3.bf16.msra.mxu0 %v4060_v56  ;;  %3169 = vmatpush3.bf16.msra.mxu1 %v4062_v57 }
 0x2c5   :  { %3150 = vmatprep.subr.bf16.mxu0 %v4896_v38  ;;  %3170 = vmatprep.subr.bf16.mxu1 %v4896_v38 }
 0x2c6   :  { %3164 = vmatprep.mubr.msk.bf16.mxu0 %vm3873_vm0, %v4896_v38  ;;  %3184 = vmatprep.mubr.msk.bf16.mxu1 %vm3873_vm0, %v4896_v38 }
 0x2c8   :  { %3151 = vmatpush3.bf16.msra.mxu0 %v4070_v58  ;;  %3171 = vmatpush3.bf16.msra.mxu1 %v4072_v59 }
 0x2c9   :  { %3152 = vmatprep.subr.bf16.mxu0 %v4896_v38  ;;  %3172 = vmatprep.subr.bf16.mxu1 %v4896_v38 }
 0x2cc   :  { %3153 = vmatpush3.bf16.msra.mxu0 %v4082_v60  ;;  %3173 = vmatpush3.bf16.msra.mxu1 %v4084_v61 }
 0x2cd   :  { %3154 = vmatprep.subr.bf16.mxu0 %v4896_v38  ;;  %3174 = vmatprep.subr.bf16.mxu1 %v4896_v38 }
 0x2d0   :  { %3155 = vmatpush3.bf16.msra.mxu0 %v4090_v62  ;;  %3175 = vmatpush3.bf16.msra.mxu1 %v4092_v63 }
 0x2d1   :  { %3156 = vmatprep.subr.bf16.mxu0 %v4896_v38  ;;  %3176 = vmatprep.subr.bf16.mxu1 %v4896_v38 }
 0x2d4   :  { %3157 = vmatpush3.bf16.msra.mxu0 %v4098_v0  ;;  %3177 = vmatpush3.bf16.msra.mxu1 %v4100_v2 }
 0x2d5   :  { %3158 = vmatprep.subr.bf16.mxu0 %v4896_v38  ;;  %3178 = vmatprep.subr.bf16.mxu1 %v4896_v38 }
 0x2d8   :  { %3159 = vmatpush3.bf16.msra.mxu0 %v4106_v3  ;;  %3179 = vmatpush3.bf16.msra.mxu1 %v4108_v4 }
 0x2d9   :  { %3160 = vmatprep.subr.bf16.mxu0 %v4896_v38  ;;  %3180 = vmatprep.subr.bf16.mxu1 %v4896_v38 }
 0x2dc   :  { %3161 = vmatpush3.bf16.msra.mxu0 %v4114_v5  ;;  %3181 = vmatpush3.bf16.msra.mxu1 %v4116_v6 }
 0x2dd   :  { %3162 = vmatprep.subr.bf16.mxu0 %v4896_v38  ;;  %3182 = vmatprep.subr.bf16.mxu1 %v4896_v38 }
 0x2e0   :  { %3163 = vmatpush3.bf16.msra.mxu0 %v4122_v7  ;;  %3183 = vmatpush3.bf16.msra.mxu1 %v4124_v8 }
 0x2e1   :  { %3188 = vmatprep.subr.bf16.mxu0 %v4896_v38  ;;  %3208 = vmatprep.subr.bf16.mxu1 %v4896_v38 }
 0x2e3   :  { %3165 = vmatmul.mubr.bf16.vlgmr.msra.gmra.mrb[40].mxu0 %v1410_v21  ;;  %3185 = vmatmul.mubr.bf16.vlgmr.msra.gmra.mrb[40].mxu1 %v1410_v21  ;;  %v4900_v21 = vld [vmem:[#allocation15_spill] sm:$0xff] }
 0x2e4   :  { %3189 = vmatpush3.bf16.msra.mxu0 %v3986_v36  ;;  %3209 = vmatpush3.bf16.msra.mxu1 %v3988_v37 }
 0x2e5   :  { %3190 = vmatprep.subr.bf16.mxu0 %v4896_v38  ;;  %3210 = vmatprep.subr.bf16.mxu1 %v4896_v38 }
 0x2e6   :  { %3204 = vmatprep.mubr.msk.bf16.mxu0 %vm3873_vm0, %v4896_v38  ;;  %3224 = vmatprep.mubr.msk.bf16.mxu1 %vm3873_vm0, %v4896_v38 }
 0x2e8   :  { %3191 = vmatpush3.bf16.msra.mxu0 %v3994_v39  ;;  %3211 = vmatpush3.bf16.msra.mxu1 %v3996_v40 }
 0x2e9   :  { %3192 = vmatprep.subr.bf16.mxu0 %v4896_v38  ;;  %3212 = vmatprep.subr.bf16.mxu1 %v4896_v38 }
 0x2ec   :  { %3193 = vmatpush3.bf16.msra.mxu0 %v4004_v42  ;;  %3213 = vmatpush3.bf16.msra.mxu1 %v4006_v43 }
 0x2ed   :  { %3194 = vmatprep.subr.bf16.mxu0 %v4896_v38  ;;  %3214 = vmatprep.subr.bf16.mxu1 %v4896_v38 }
 0x2f0   :  { %3195 = vmatpush3.bf16.msra.mxu0 %v4012_v44  ;;  %3215 = vmatpush3.bf16.msra.mxu1 %v4014_v45 }
 0x2f1   :  { %3196 = vmatprep.subr.bf16.mxu0 %v4896_v38  ;;  %3216 = vmatprep.subr.bf16.mxu1 %v4896_v38 }
 0x2f4   :  { %3197 = vmatpush3.bf16.msra.mxu0 %v4022_v47  ;;  %3217 = vmatpush3.bf16.msra.mxu1 %v4024_v48 }
 0x2f5   :  { %3198 = vmatprep.subr.bf16.mxu0 %v4896_v38  ;;  %3218 = vmatprep.subr.bf16.mxu1 %v4896_v38 }
 0x2f8   :  { %3199 = vmatpush3.bf16.msra.mxu0 %v4030_v49  ;;  %3219 = vmatpush3.bf16.msra.mxu1 %v4032_v50 }
 0x2f9   :  { %3200 = vmatprep.subr.bf16.mxu0 %v4896_v38  ;;  %3220 = vmatprep.subr.bf16.mxu1 %v4896_v38 }
 0x2fc   :  { %3201 = vmatpush3.bf16.msra.mxu0 %v4040_v52  ;;  %3221 = vmatpush3.bf16.msra.mxu1 %v4042_v53 }
 0x2fd   :  { %3202 = vmatprep.subr.bf16.mxu0 %v4896_v38  ;;  %3222 = vmatprep.subr.bf16.mxu1 %v4896_v38 }
 0x300   :  { %3203 = vmatpush3.bf16.msra.mxu0 %v4048_v54  ;;  %3223 = vmatpush3.bf16.msra.mxu1 %v4050_v55  ;;  %v4897_v54 = vld [vmem:[#allocation11_spill] sm:$0xff] }
 0x301   :  { %3228 = vmatprep.subr.bf16.mxu0 %v4896_v38  ;;  %3248 = vmatprep.subr.bf16.mxu1 %v4896_v38 }
 0x396   :  { %v1446_v36 = vpop.f32.mrb[36].mxu0  ;;  %v1488_v37 = vpop.f32.mrb[36].mxu1 }
 0x397   :  { %v1452_v39 = vadd.f32 %v1446_v36, %v4203_v46  ;;  %v1494_v40 = vadd.f32 %v1488_v37, %v4207_v14  ;;  %v3126_v42 = vpop.f32.mrb[37].mxu0  ;;  %v3146_v43 = vpop.f32.mrb[37].mxu1 }
 0x398   :  { %v1449_v44 = vpop.f32.mrb[38].mxu0  ;;  %v1491_v45 = vpop.f32.mrb[38].mxu1 }
 0x399   :  { %v3127_v47 = vpop.f32.mrb[39].mxu0  ;;  %v3147_v48 = vpop.f32.mrb[39].mxu1  ;;  %v1583_v49 = vmul.f32 0.5, %v1494_v40  ;;  %v1579_v50 = vmul.f32 0.5, %v1452_v39 }
 0x39b   :  { %3702 = vtanh.f32 %v1583_v49 }
 0x39c   :  { %3704 = vtanh.f32 %v1579_v50  ;;  %v4901_v50 = vld [vmem:[#allocation14_spill] sm:$0xff] }
 0x3a5   :  { %v3703_v13 = vpop.eup %3702 }
 0x3a6   :  { %v3705_v1 = vpop.eup %3704  ;;  %v1585_v33 = vmul.f32 0.5, %v3703_v13 }
 0x3a7   :  { %v1581_v10 = vmul.f32 0.5, %v3705_v1 }
 0x3a8   :  { %v1586_v30 = vadd.f32 0.5, %v1585_v33 }
 0x3a9   :  { %v1582_v27 = vadd.f32 0.5, %v1581_v10 }
 0x3aa   :  { %v1592_v24 = vmul.f32 %v1586_v30, %v4346_v35 }
 0x3b6   :  { %v1530_v52 = vpop.f32.mrb[40].mxu0  ;;  %v1572_v53 = vpop.f32.mrb[40].mxu1 }
 0x3b7   :  { %v1536_v55 = vadd.f32 %v1530_v52, %v4897_v54  ;;  %v1578_v51 = vadd.f32 %v1572_v53, %v4898_v12  ;;  %v3166_v9 = vpop.f32.mrb[41].mxu0  ;;  %v3186_v46 = vpop.f32.mrb[41].mxu1  ;;  %v4902_v53 = vld [vmem:[#allocation16_spill] sm:$0xff] }
 0x3b8   :  { %v1533_v11 = vpop.f32.mrb[42].mxu0  ;;  %v1575_v14 = vpop.f32.mrb[42].mxu1 }
 0x3b9   :  { %3706 = vtanh.f32 %v1536_v55  ;;  %v3167_v15 = vpop.f32.mrb[43].mxu0  ;;  %v3187_v29 = vpop.f32.mrb[43].mxu1  ;;  %v1588_v16 = vmul.f32 0.5, %v1578_v51 }
 0x3bb   :  { %3708 = vtanh.f32 %v1588_v16 }
 0x3c3   :  { %v3707_v23 = vpop.eup %3706 }
 0x3c4   :  { %v1593_v19 = vmul.f32 %v3707_v23, %v1582_v27 }
 0x3c5   :  { %v3709_v28 = vpop.eup %3708 }
 0x3c6   :  { %v4426_v20 = vadd.f32 %v1593_v19, %v1592_v24  ;;  %v1590_v25 = vmul.f32 0.5, %v3709_v28 }
 0x3c8   :  { %3710 = vtanh.f32 %v4426_v20  ;;  %v1591_v31 = vadd.f32 0.5, %v1590_v25 }
 0x3d2   :  { %v3711_v32 = vpop.eup %3710 }
 0x3d3   :  { %v1596_v41 = vmul.f32 %v3711_v32, %v1591_v31 }
 0x3d5   :  { %v1597_v26 = vpack.c.bf16 %v1596_v41, %v1596_v41  ;;  %v4541_v41 = vld [vmem:[#allocation8 + $0x8] ss:$16 sps:$4 sm:$0xff]  }
 0x3d7   :  { %3205 = vmatmul.mubr.bf16.vlgmr.msra.gmra.mrb[44].mxu0 %v1597_v26  ;;  %3225 = vmatmul.mubr.bf16.vlgmr.msra.gmra.mrb[44].mxu1 %v1597_v26 }
 0x3d8   :  { %3229 = vmatpush3.bf16.msra.mxu0 %v4060_v56  ;;  %3249 = vmatpush3.bf16.msra.mxu1 %v4062_v57  ;;  %v4465_v56 = vld [vmem:[#allocation8] ss:$16 sps:$4 sm:$0xff]   ;;  %v4468_v57 = vld [vmem:[#allocation8 + $0x4] ss:$16 sps:$4 sm:$0xff]  }
 0x3d9   :  { %3230 = vmatprep.subr.bf16.mxu0 %v4896_v38  ;;  %3250 = vmatprep.subr.bf16.mxu1 %v4896_v38 }
 0x3da   :  { %3244 = vmatprep.mubr.msk.bf16.mxu0 %vm3873_vm0, %v4896_v38  ;;  %3264 = vmatprep.mubr.msk.bf16.mxu1 %vm3873_vm0, %v4896_v38 }
 0x3dc   :  { %3231 = vmatpush3.bf16.msra.mxu0 %v4070_v58  ;;  %3251 = vmatpush3.bf16.msra.mxu1 %v4072_v59  ;;  %v4477_v58 = vld [vmem:[#allocation8 + $0x20] ss:$16 sps:$4 sm:$0xff]   ;;  %v4480_v59 = vld [vmem:[#allocation8 + $0x24] ss:$16 sps:$4 sm:$0xff]  }
 0x3dd   :  { %3232 = vmatprep.subr.bf16.mxu0 %v4896_v38  ;;  %3252 = vmatprep.subr.bf16.mxu1 %v4896_v38 }
 0x3e0   :  { %3233 = vmatpush3.bf16.msra.mxu0 %v4082_v60  ;;  %3253 = vmatpush3.bf16.msra.mxu1 %v4084_v61  ;;  %v4485_v60 = vld [vmem:[#allocation8 + $0x40] ss:$16 sps:$4 sm:$0xff]   ;;  %v4488_v61 = vld [vmem:[#allocation8 + $0x44] ss:$16 sps:$4 sm:$0xff]  }
 0x3e1   :  { %3234 = vmatprep.subr.bf16.mxu0 %v4896_v38  ;;  %3254 = vmatprep.subr.bf16.mxu1 %v4896_v38 }
 0x3e4   :  { %3235 = vmatpush3.bf16.msra.mxu0 %v4090_v62  ;;  %3255 = vmatpush3.bf16.msra.mxu1 %v4092_v63  ;;  %v4493_v62 = vld [vmem:[#allocation8 + $0x60] ss:$16 sps:$4 sm:$0xff]   ;;  %v4496_v63 = vld [vmem:[#allocation8 + $0x64] ss:$16 sps:$4 sm:$0xff]  }
 0x3e5   :  { %3236 = vmatprep.subr.bf16.mxu0 %v4896_v38  ;;  %3256 = vmatprep.subr.bf16.mxu1 %v4896_v38 }
 0x3e8   :  { %3237 = vmatpush3.bf16.msra.mxu0 %v4098_v0  ;;  %3257 = vmatpush3.bf16.msra.mxu1 %v4100_v2  ;;  %v4501_v0 = vld [vmem:[#allocation8 + $0x80] ss:$16 sps:$4 sm:$0xff]   ;;  %v4504_v2 = vld [vmem:[#allocation8 + $0x84] ss:$16 sps:$4 sm:$0xff]  }
 0x3e9   :  { %3238 = vmatprep.subr.bf16.mxu0 %v4896_v38  ;;  %3258 = vmatprep.subr.bf16.mxu1 %v4896_v38 }
 0x3ec   :  { %3239 = vmatpush3.bf16.msra.mxu0 %v4106_v3  ;;  %3259 = vmatpush3.bf16.msra.mxu1 %v4108_v4  ;;  %v4509_v3 = vld [vmem:[#allocation8 + $0xa0] ss:$16 sps:$4 sm:$0xff]   ;;  %v4512_v4 = vld [vmem:[#allocation8 + $0xa4] ss:$16 sps:$4 sm:$0xff]  }
 0x3ed   :  { %3240 = vmatprep.subr.bf16.mxu0 %v4896_v38  ;;  %3260 = vmatprep.subr.bf16.mxu1 %v4896_v38 }
 0x3f0   :  { %3241 = vmatpush3.bf16.msra.mxu0 %v4114_v5  ;;  %3261 = vmatpush3.bf16.msra.mxu1 %v4116_v6  ;;  %v4517_v5 = vld [vmem:[#allocation8 + $0xc0] ss:$16 sps:$4 sm:$0xff]   ;;  %v4520_v6 = vld [vmem:[#allocation8 + $0xc4] ss:$16 sps:$4 sm:$0xff]  }
 0x3f1   :  { %3242 = vmatprep.subr.bf16.mxu0 %v4896_v38  ;;  %3262 = vmatprep.subr.bf16.mxu1 %v4896_v38 }
 0x3f4   :  { %3243 = vmatpush3.bf16.msra.mxu0 %v4122_v7  ;;  %3263 = vmatpush3.bf16.msra.mxu1 %v4124_v8  ;;  %v4525_v7 = vld [vmem:[#allocation8 + $0xe0] ss:$16 sps:$4 sm:$0xff]   ;;  %v4528_v8 = vld [vmem:[#allocation8 + $0xe4] ss:$16 sps:$4 sm:$0xff]  }
 0x3f5   :  { %3268 = vmatprep.subr.bf16.mxu0 %v4896_v38  ;;  %3288 = vmatprep.subr.bf16.mxu1 %v4896_v38 }
 0x3f7   :  { %3245 = vmatmul.mubr.bf16.vlgmr.msra.gmra.mrb[48].mxu0 %v1597_v26  ;;  %3265 = vmatmul.mubr.bf16.vlgmr.msra.gmra.mrb[48].mxu1 %v1597_v26  ;;  %v4544_v26 = vld [vmem:[#allocation8 + $0xc] ss:$16 sps:$4 sm:$0xff]  }
 0x3f8   :  { %3269 = vmatpush3.bf16.msra.mxu0 %v4465_v56  ;;  %3289 = vmatpush3.bf16.msra.mxu1 %v4468_v57 }
 0x3f9   :  { %3270 = vmatprep.subr.bf16.mxu0 %v4896_v38  ;;  %3290 = vmatprep.subr.bf16.mxu1 %v4896_v38 }
 0x3fa   :  { %3284 = vmatprep.mubr.msk.bf16.mxu0 %vm3873_vm0, %v4896_v38  ;;  %3304 = vmatprep.mubr.msk.bf16.mxu1 %vm3873_vm0, %v4896_v38 }
 0x3fc   :  { %3271 = vmatpush3.bf16.msra.mxu0 %v4477_v58  ;;  %3291 = vmatpush3.bf16.msra.mxu1 %v4480_v59 }
 0x3fd   :  { %3272 = vmatprep.subr.bf16.mxu0 %v4896_v38  ;;  %3292 = vmatprep.subr.bf16.mxu1 %v4896_v38 }
 0x400   :  { %3273 = vmatpush3.bf16.msra.mxu0 %v4485_v60  ;;  %3293 = vmatpush3.bf16.msra.mxu1 %v4488_v61 }
 0x401   :  { %3274 = vmatprep.subr.bf16.mxu0 %v4896_v38  ;;  %3294 = vmatprep.subr.bf16.mxu1 %v4896_v38 }
 0x404   :  { %3275 = vmatpush3.bf16.msra.mxu0 %v4493_v62  ;;  %3295 = vmatpush3.bf16.msra.mxu1 %v4496_v63 }
 0x405   :  { %3276 = vmatprep.subr.bf16.mxu0 %v4896_v38  ;;  %3296 = vmatprep.subr.bf16.mxu1 %v4896_v38 }
 0x408   :  { %3277 = vmatpush3.bf16.msra.mxu0 %v4501_v0  ;;  %3297 = vmatpush3.bf16.msra.mxu1 %v4504_v2 }
 0x409   :  { %3278 = vmatprep.subr.bf16.mxu0 %v4896_v38  ;;  %3298 = vmatprep.subr.bf16.mxu1 %v4896_v38 }
 0x40c   :  { %3279 = vmatpush3.bf16.msra.mxu0 %v4509_v3  ;;  %3299 = vmatpush3.bf16.msra.mxu1 %v4512_v4 }
 0x40d   :  { %3280 = vmatprep.subr.bf16.mxu0 %v4896_v38  ;;  %3300 = vmatprep.subr.bf16.mxu1 %v4896_v38 }
 0x410   :  { %3281 = vmatpush3.bf16.msra.mxu0 %v4517_v5  ;;  %3301 = vmatpush3.bf16.msra.mxu1 %v4520_v6 }
 0x411   :  { %3282 = vmatprep.subr.bf16.mxu0 %v4896_v38  ;;  %3302 = vmatprep.subr.bf16.mxu1 %v4896_v38 }
 0x414   :  { %3283 = vmatpush3.bf16.msra.mxu0 %v4525_v7  ;;  %3303 = vmatpush3.bf16.msra.mxu1 %v4528_v8 }
 0x415   :  { %3308 = vmatprep.subr.bf16.mxu0 %v4896_v38  ;;  %3328 = vmatprep.subr.bf16.mxu1 %v4896_v38 }
 0x4aa   :  { %v1633_v35 = vpop.f32.mrb[44].mxu0  ;;  %v1675_v34 = vpop.f32.mrb[44].mxu1 }
 0x4ab   :  { %v1639_v18 = vadd.f32 %v1633_v35, %v4899_v17  ;;  %v1681_v36 = vadd.f32 %v1675_v34, %v4900_v21  ;;  %v3206_v37 = vpop.f32.mrb[45].mxu0  ;;  %v3226_v39 = vpop.f32.mrb[45].mxu1  ;;  %v4556_v35 = vld [vmem:[#allocation8 + $0x2c] ss:$16 sps:$4 sm:$0xff]   ;;  %v4561_v34 = vld [vmem:[#allocation8 + $0x48] ss:$16 sps:$4 sm:$0xff]  }
 0x4ac   :  { %v1636_v40 = vpop.f32.mrb[46].mxu0  ;;  %v1678_v42 = vpop.f32.mrb[46].mxu1  ;;  %v4564_v17 = vld [vmem:[#allocation8 + $0x4c] ss:$16 sps:$4 sm:$0xff]   ;;  %v4585_v39 = vld [vmem:[#allocation8 + $0xa8] ss:$16 sps:$4 sm:$0xff]  }
 0x4ad   :  { %v3207_v43 = vpop.f32.mrb[47].mxu0  ;;  %v3227_v44 = vpop.f32.mrb[47].mxu1  ;;  %v1770_v45 = vmul.f32 0.5, %v1681_v36  ;;  %v1766_v47 = vmul.f32 0.5, %v1639_v18  ;;  %v4569_v18 = vld [vmem:[#allocation8 + $0x68] ss:$16 sps:$4 sm:$0xff]  }
 0x4ae   :  { %v4572_v21 = vld [vmem:[#allocation8 + $0x6c] ss:$16 sps:$4 sm:$0xff]   ;;  %v4577_v36 = vld [vmem:[#allocation8 + $0x88] ss:$16 sps:$4 sm:$0xff]  }
 0x4af   :  { %3712 = vtanh.f32 %v1770_v45  ;;  %v4580_v37 = vld [vmem:[#allocation8 + $0x8c] ss:$16 sps:$4 sm:$0xff]   ;;  %v4593_v42 = vld [vmem:[#allocation8 + $0xc8] ss:$16 sps:$4 sm:$0xff]  }
 0x4b0   :  { %3714 = vtanh.f32 %v1766_v47  ;;  %v4588_v40 = vld [vmem:[#allocation8 + $0xac] ss:$16 sps:$4 sm:$0xff]   ;;  %v4601_v44 = vld [vmem:[#allocation8 + $0xe8] ss:$16 sps:$4 sm:$0xff]  }
 0x4b1   :  { %v4596_v43 = vld [vmem:[#allocation8 + $0xcc] ss:$16 sps:$4 sm:$0xff]  }
 0x4b2   :  { %v4604_v45 = vld [vmem:[#allocation8 + $0xec] ss:$16 sps:$4 sm:$0xff]  }
 0x4b9   :  { %v3713_v46 = vpop.eup %3712 }
 0x4ba   :  { %v3715_v13 = vpop.eup %3714  ;;  %v1772_v15 = vmul.f32 0.5, %v3713_v46 }
 0x4bb   :  { %v1768_v1 = vmul.f32 0.5, %v3715_v13 }
 0x4bc   :  { %v1773_v33 = vadd.f32 0.5, %v1772_v15 }
 0x4bd   :  { %v1769_v16 = vadd.f32 0.5, %v1768_v1 }
 0x4be   :  { %v1779_v30 = vmul.f32 %v1773_v33, %v4426_v20  ;;  %v4553_v20 = vld [vmem:[#allocation8 + $0x28] ss:$16 sps:$4 sm:$0xff]  }
 0x4bf   :  { %v4906_v33 = vld [vmem:[#allocation20_spill] sm:$0xff] }
 0x4ca   :  { %v1717_v48 = vpop.f32.mrb[48].mxu0  ;;  %v1759_v49 = vpop.f32.mrb[48].mxu1 }
 0x4cb   :  { %v1723_v52 = vadd.f32 %v1717_v48, %v4901_v50  ;;  %v1765_v54 = vadd.f32 %v1759_v49, %v4902_v53  ;;  %v3246_v55 = vpop.f32.mrb[49].mxu0  ;;  %v3266_v12 = vpop.f32.mrb[49].mxu1  ;;  %v4903_v49 = vld [vmem:[#allocation17_spill] sm:$0xff] }
 0x4cc   :  { %v1720_v51 = vpop.f32.mrb[50].mxu0  ;;  %v1762_v9 = vpop.f32.mrb[50].mxu1 }
 0x4cd   :  { %3716 = vtanh.f32 %v1723_v52  ;;  %v3247_v11 = vpop.f32.mrb[51].mxu0  ;;  %v3267_v14 = vpop.f32.mrb[51].mxu1  ;;  %v1775_v29 = vmul.f32 0.5, %v1765_v54  ;;  %v4904_v52 = vld [vmem:[#allocation19_spill] sm:$0xff] }
 0x4cf   :  { %3718 = vtanh.f32 %v1775_v29  ;;  %v4905_v29 = vld [vmem:[#allocation18_spill] sm:$0xff] }
 0x4d7   :  { %v3717_v10 = vpop.eup %3716 }
 0x4d8   :  { %v1780_v27 = vmul.f32 %v3717_v10, %v1769_v16 }
 0x4d9   :  { %v3719_v24 = vpop.eup %3718 }
 0x4da   :  { %v4538_v23 = vadd.f32 %v1780_v27, %v1779_v30  ;;  %v1777_v19 = vmul.f32 0.5, %v3719_v24 }
 0x4dc   :  { %3720 = vtanh.f32 %v4538_v23  ;;  %v1778_v28 = vadd.f32 0.5, %v1777_v19 }
 0x4e6   :  { %v3721_v25 = vpop.eup %3720 }
 0x4e7   :  { %v1783_v31 = vmul.f32 %v3721_v25, %v1778_v28 }
 0x4e9   :  { %v1784_v32 = vpack.c.bf16 %v1783_v31, %v1783_v31 }
 0x4eb   :  { %3285 = vmatmul.mubr.bf16.vlgmr.msra.gmra.mrb[52].mxu0 %v1784_v32  ;;  %3305 = vmatmul.mubr.bf16.vlgmr.msra.gmra.mrb[52].mxu1 %v1784_v32 }
 0x4ec   :  { %3309 = vmatpush3.bf16.msra.mxu0 %v4541_v41  ;;  %3329 = vmatpush3.bf16.msra.mxu1 %v4544_v26 }
 0x4ed   :  { %3310 = vmatprep.subr.bf16.mxu0 %v4896_v38  ;;  %3330 = vmatprep.subr.bf16.mxu1 %v4896_v38 }
 0x4ee   :  { %3324 = vmatprep.mubr.msk.bf16.mxu0 %vm3873_vm0, %v4896_v38  ;;  %3344 = vmatprep.mubr.msk.bf16.mxu1 %vm3873_vm0, %v4896_v38 }
 0x4f0   :  { %3311 = vmatpush3.bf16.msra.mxu0 %v4553_v20  ;;  %3331 = vmatpush3.bf16.msra.mxu1 %v4556_v35 }
 0x4f1   :  { %3312 = vmatprep.subr.bf16.mxu0 %v4896_v38  ;;  %3332 = vmatprep.subr.bf16.mxu1 %v4896_v38 }
 0x4f4   :  { %3313 = vmatpush3.bf16.msra.mxu0 %v4561_v34  ;;  %3333 = vmatpush3.bf16.msra.mxu1 %v4564_v17 }
 0x4f5   :  { %3314 = vmatprep.subr.bf16.mxu0 %v4896_v38  ;;  %3334 = vmatprep.subr.bf16.mxu1 %v4896_v38 }
 0x4f8   :  { %3315 = vmatpush3.bf16.msra.mxu0 %v4569_v18  ;;  %3335 = vmatpush3.bf16.msra.mxu1 %v4572_v21 }
 0x4f9   :  { %3316 = vmatprep.subr.bf16.mxu0 %v4896_v38  ;;  %3336 = vmatprep.subr.bf16.mxu1 %v4896_v38 }
 0x4fc   :  { %3317 = vmatpush3.bf16.msra.mxu0 %v4577_v36  ;;  %3337 = vmatpush3.bf16.msra.mxu1 %v4580_v37 }
 0x4fd   :  { %3318 = vmatprep.subr.bf16.mxu0 %v4896_v38  ;;  %3338 = vmatprep.subr.bf16.mxu1 %v4896_v38 }
 0x500   :  { %3319 = vmatpush3.bf16.msra.mxu0 %v4585_v39  ;;  %3339 = vmatpush3.bf16.msra.mxu1 %v4588_v40 }
 0x501   :  { %3320 = vmatprep.subr.bf16.mxu0 %v4896_v38  ;;  %3340 = vmatprep.subr.bf16.mxu1 %v4896_v38 }
 0x504   :  { %3321 = vmatpush3.bf16.msra.mxu0 %v4593_v42  ;;  %3341 = vmatpush3.bf16.msra.mxu1 %v4596_v43 }
 0x505   :  { %3322 = vmatprep.subr.bf16.mxu0 %v4896_v38  ;;  %3342 = vmatprep.subr.bf16.mxu1 %v4896_v38 }
 0x508   :  { %3323 = vmatpush3.bf16.msra.mxu0 %v4601_v44  ;;  %3343 = vmatpush3.bf16.msra.mxu1 %v4604_v45 }
 0x509   :  { %3348 = vmatprep.subr.bf16.mxu0 %v4896_v38  ;;  %3368 = vmatprep.subr.bf16.mxu1 %v4896_v38 }
 0x50b   :  { %3325 = vmatmul.mubr.bf16.vlgmr.msra.gmra.mrb[56].mxu0 %v1784_v32  ;;  %3345 = vmatmul.mubr.bf16.vlgmr.msra.gmra.mrb[56].mxu1 %v1784_v32 }
 0x50c   :  { %3349 = vmatpush3.bf16.msra.mxu0 %v4465_v56  ;;  %3369 = vmatpush3.bf16.msra.mxu1 %v4468_v57 }
 0x50d   :  { %3350 = vmatprep.subr.bf16.mxu0 %v4896_v38  ;;  %3370 = vmatprep.subr.bf16.mxu1 %v4896_v38 }
 0x50e   :  { %3364 = vmatprep.mubr.msk.bf16.mxu0 %vm3873_vm0, %v4896_v38  ;;  %3384 = vmatprep.mubr.msk.bf16.mxu1 %vm3873_vm0, %v4896_v38 }
 0x510   :  { %3351 = vmatpush3.bf16.msra.mxu0 %v4477_v58  ;;  %3371 = vmatpush3.bf16.msra.mxu1 %v4480_v59 }
 0x511   :  { %3352 = vmatprep.subr.bf16.mxu0 %v4896_v38  ;;  %3372 = vmatprep.subr.bf16.mxu1 %v4896_v38 }
 0x514   :  { %3353 = vmatpush3.bf16.msra.mxu0 %v4485_v60  ;;  %3373 = vmatpush3.bf16.msra.mxu1 %v4488_v61 }
 0x515   :  { %3354 = vmatprep.subr.bf16.mxu0 %v4896_v38  ;;  %3374 = vmatprep.subr.bf16.mxu1 %v4896_v38 }
 0x518   :  { %3355 = vmatpush3.bf16.msra.mxu0 %v4493_v62  ;;  %3375 = vmatpush3.bf16.msra.mxu1 %v4496_v63 }
 0x519   :  { %3356 = vmatprep.subr.bf16.mxu0 %v4896_v38  ;;  %3376 = vmatprep.subr.bf16.mxu1 %v4896_v38 }
 0x51c   :  { %3357 = vmatpush3.bf16.msra.mxu0 %v4501_v0  ;;  %3377 = vmatpush3.bf16.msra.mxu1 %v4504_v2 }
 0x51d   :  { %3358 = vmatprep.subr.bf16.mxu0 %v4896_v38  ;;  %3378 = vmatprep.subr.bf16.mxu1 %v4896_v38 }
 0x520   :  { %3359 = vmatpush3.bf16.msra.mxu0 %v4509_v3  ;;  %3379 = vmatpush3.bf16.msra.mxu1 %v4512_v4 }
 0x521   :  { %3360 = vmatprep.subr.bf16.mxu0 %v4896_v38  ;;  %3380 = vmatprep.subr.bf16.mxu1 %v4896_v38 }
 0x524   :  { %3361 = vmatpush3.bf16.msra.mxu0 %v4517_v5  ;;  %3381 = vmatpush3.bf16.msra.mxu1 %v4520_v6 }
 0x525   :  { %3362 = vmatprep.subr.bf16.mxu0 %v4896_v38  ;;  %3382 = vmatprep.subr.bf16.mxu1 %v4896_v38 }
 0x528   :  { %3363 = vmatpush3.bf16.msra.mxu0 %v4525_v7  ;;  %3383 = vmatpush3.bf16.msra.mxu1 %v4528_v8 }
 0x529   :  { %3388 = vmatprep.subr.bf16.mxu0 %v4896_v38  ;;  %3408 = vmatprep.subr.bf16.mxu1 %v4896_v38 }
 0x5be   :  { %v1820_v47 = vpop.f32.mrb[52].mxu0  ;;  %v1862_v48 = vpop.f32.mrb[52].mxu1 }
 0x5bf   :  { %v1826_v50 = vadd.f32 %v1820_v47, %v4903_v49  ;;  %v1868_v53 = vadd.f32 %v1862_v48, %v4904_v52  ;;  %v3286_v54 = vpop.f32.mrb[53].mxu0  ;;  %v3306_v55 = vpop.f32.mrb[53].mxu1 }
 0x5c0   :  { %v1823_v12 = vpop.f32.mrb[54].mxu0  ;;  %v1865_v51 = vpop.f32.mrb[54].mxu1 }
 0x5c1   :  { %v3287_v9 = vpop.f32.mrb[55].mxu0  ;;  %v3307_v46 = vpop.f32.mrb[55].mxu1  ;;  %v1957_v11 = vmul.f32 0.5, %v1868_v53  ;;  %v1953_v14 = vmul.f32 0.5, %v1826_v50 }
 0x5c3   :  { %3722 = vtanh.f32 %v1957_v11 }
 0x5c4   :  { %3724 = vtanh.f32 %v1953_v14 }
 0x5cd   :  { %v3723_v19 = vpop.eup %3722 }
 0x5ce   :  { %v3725_v31 = vpop.eup %3724  ;;  %v1959_v32 = vmul.f32 0.5, %v3723_v19 }
 0x5cf   :  { %v1955_v48 = vmul.f32 0.5, %v3725_v31 }
 0x5d0   :  { %v1960_v49 = vadd.f32 0.5, %v1959_v32 }
 0x5d1   :  { %v1956_v50 = vadd.f32 0.5, %v1955_v48 }
 0x5d2   :  { %v1966_v53 = vmul.f32 %v1960_v49, %v4538_v23  ;;  %v4910_v49 = vld [vmem:[#allocation24_spill] sm:$0xff] }
 0x5de   :  { %v1904_v13 = vpop.f32.mrb[56].mxu0  ;;  %v1946_v15 = vpop.f32.mrb[56].mxu1 }
 0x5df   :  { %v1910_v1 = vadd.f32 %v1904_v13, %v4905_v29  ;;  %v1952_v16 = vadd.f32 %v1946_v15, %v4906_v33  ;;  %v3326_v10 = vpop.f32.mrb[57].mxu0  ;;  %v3346_v30 = vpop.f32.mrb[57].mxu1  ;;  %v4907_v15 = vld [vmem:[#allocation21_spill] sm:$0xff] }
 0x5e0   :  { %v1907_v27 = vpop.f32.mrb[58].mxu0  ;;  %v1949_v24 = vpop.f32.mrb[58].mxu1 }
 0x5e1   :  { %3726 = vtanh.f32 %v1910_v1  ;;  %v3327_v28 = vpop.f32.mrb[59].mxu0  ;;  %v3347_v25 = vpop.f32.mrb[59].mxu1  ;;  %v1962_v47 = vmul.f32 0.5, %v1952_v16  ;;  %v4908_v1 = vld [vmem:[#allocation23_spill] sm:$0xff] }
 0x5e3   :  { %3728 = vtanh.f32 %v1962_v47  ;;  %v4909_v47 = vld [vmem:[#allocation22_spill] sm:$0xff] }
 0x5eb   :  { %v3727_v52 = vpop.eup %3726 }
 0x5ec   :  { %v1967_v54 = vmul.f32 %v3727_v52, %v1956_v50 }
 0x5ed   :  { %v3729_v12 = vpop.eup %3728 }
 0x5ee   :  { %v4650_v55 = vadd.f32 %v1967_v54, %v1966_v53  ;;  %v1964_v51 = vmul.f32 0.5, %v3729_v12 }
 0x5f0   :  { %3730 = vtanh.f32 %v4650_v55  ;;  %v1965_v9 = vadd.f32 0.5, %v1964_v51 }
 0x5fa   :  { %v3731_v46 = vpop.eup %3730 }
 0x5fb   :  { %v1970_v11 = vmul.f32 %v3731_v46, %v1965_v9 }
 0x5fd   :  { %v1971_v14 = vpack.c.bf16 %v1970_v11, %v1970_v11 }
 0x5ff   :  { %3365 = vmatmul.mubr.bf16.vlgmr.msra.gmra.mrb[60].mxu0 %v1971_v14  ;;  %3385 = vmatmul.mubr.bf16.vlgmr.msra.gmra.mrb[60].mxu1 %v1971_v14 }
 0x600   :  { %3389 = vmatpush3.bf16.msra.mxu0 %v4541_v41  ;;  %3409 = vmatpush3.bf16.msra.mxu1 %v4544_v26 }
 0x601   :  { %3390 = vmatprep.subr.bf16.mxu0 %v4896_v38  ;;  %3410 = vmatprep.subr.bf16.mxu1 %v4896_v38 }
 0x602   :  { %3404 = vmatprep.mubr.msk.bf16.mxu0 %vm3873_vm0, %v4896_v38  ;;  %3424 = vmatprep.mubr.msk.bf16.mxu1 %vm3873_vm0, %v4896_v38 }
 0x604   :  { %3391 = vmatpush3.bf16.msra.mxu0 %v4553_v20  ;;  %3411 = vmatpush3.bf16.msra.mxu1 %v4556_v35 }
 0x605   :  { %3392 = vmatprep.subr.bf16.mxu0 %v4896_v38  ;;  %3412 = vmatprep.subr.bf16.mxu1 %v4896_v38 }
 0x608   :  { %3393 = vmatpush3.bf16.msra.mxu0 %v4561_v34  ;;  %3413 = vmatpush3.bf16.msra.mxu1 %v4564_v17 }
 0x609   :  { %3394 = vmatprep.subr.bf16.mxu0 %v4896_v38  ;;  %3414 = vmatprep.subr.bf16.mxu1 %v4896_v38 }
 0x60c   :  { %3395 = vmatpush3.bf16.msra.mxu0 %v4569_v18  ;;  %3415 = vmatpush3.bf16.msra.mxu1 %v4572_v21 }
 0x60d   :  { %3396 = vmatprep.subr.bf16.mxu0 %v4896_v38  ;;  %3416 = vmatprep.subr.bf16.mxu1 %v4896_v38 }
 0x610   :  { %3397 = vmatpush3.bf16.msra.mxu0 %v4577_v36  ;;  %3417 = vmatpush3.bf16.msra.mxu1 %v4580_v37 }
 0x611   :  { %3398 = vmatprep.subr.bf16.mxu0 %v4896_v38  ;;  %3418 = vmatprep.subr.bf16.mxu1 %v4896_v38 }
 0x614   :  { %3399 = vmatpush3.bf16.msra.mxu0 %v4585_v39  ;;  %3419 = vmatpush3.bf16.msra.mxu1 %v4588_v40 }
 0x615   :  { %3400 = vmatprep.subr.bf16.mxu0 %v4896_v38  ;;  %3420 = vmatprep.subr.bf16.mxu1 %v4896_v38 }
 0x618   :  { %3401 = vmatpush3.bf16.msra.mxu0 %v4593_v42  ;;  %3421 = vmatpush3.bf16.msra.mxu1 %v4596_v43 }
 0x619   :  { %3402 = vmatprep.subr.bf16.mxu0 %v4896_v38  ;;  %3422 = vmatprep.subr.bf16.mxu1 %v4896_v38 }
 0x61c   :  { %3403 = vmatpush3.bf16.msra.mxu0 %v4601_v44  ;;  %3423 = vmatpush3.bf16.msra.mxu1 %v4604_v45 }
 0x61d   :  { %3428 = vmatprep.subr.bf16.mxu0 %v4896_v38  ;;  %3448 = vmatprep.subr.bf16.mxu1 %v4896_v38 }
 0x61f   :  { %3405 = vmatmul.mubr.bf16.vlgmr.msra.gmra.mrb[64].mxu0 %v1971_v14  ;;  %3425 = vmatmul.mubr.bf16.vlgmr.msra.gmra.mrb[64].mxu1 %v1971_v14 }
 0x620   :  { %3429 = vmatpush3.bf16.msra.mxu0 %v4465_v56  ;;  %3449 = vmatpush3.bf16.msra.mxu1 %v4468_v57 }
 0x621   :  { %3430 = vmatprep.subr.bf16.mxu0 %v4896_v38  ;;  %3450 = vmatprep.subr.bf16.mxu1 %v4896_v38 }
 0x622   :  { %3444 = vmatprep.mubr.msk.bf16.mxu0 %vm3873_vm0, %v4896_v38  ;;  %3464 = vmatprep.mubr.msk.bf16.mxu1 %vm3873_vm0, %v4896_v38 }
 0x624   :  { %3431 = vmatpush3.bf16.msra.mxu0 %v4477_v58  ;;  %3451 = vmatpush3.bf16.msra.mxu1 %v4480_v59 }
 0x625   :  { %3432 = vmatprep.subr.bf16.mxu0 %v4896_v38  ;;  %3452 = vmatprep.subr.bf16.mxu1 %v4896_v38 }
 0x628   :  { %3433 = vmatpush3.bf16.msra.mxu0 %v4485_v60  ;;  %3453 = vmatpush3.bf16.msra.mxu1 %v4488_v61 }
 0x629   :  { %3434 = vmatprep.subr.bf16.mxu0 %v4896_v38  ;;  %3454 = vmatprep.subr.bf16.mxu1 %v4896_v38 }
 0x62c   :  { %3435 = vmatpush3.bf16.msra.mxu0 %v4493_v62  ;;  %3455 = vmatpush3.bf16.msra.mxu1 %v4496_v63 }
 0x62d   :  { %3436 = vmatprep.subr.bf16.mxu0 %v4896_v38  ;;  %3456 = vmatprep.subr.bf16.mxu1 %v4896_v38 }
 0x630   :  { %3437 = vmatpush3.bf16.msra.mxu0 %v4501_v0  ;;  %3457 = vmatpush3.bf16.msra.mxu1 %v4504_v2 }
 0x631   :  { %3438 = vmatprep.subr.bf16.mxu0 %v4896_v38  ;;  %3458 = vmatprep.subr.bf16.mxu1 %v4896_v38 }
 0x634   :  { %3439 = vmatpush3.bf16.msra.mxu0 %v4509_v3  ;;  %3459 = vmatpush3.bf16.msra.mxu1 %v4512_v4 }
 0x635   :  { %3440 = vmatprep.subr.bf16.mxu0 %v4896_v38  ;;  %3460 = vmatprep.subr.bf16.mxu1 %v4896_v38 }
 0x638   :  { %3441 = vmatpush3.bf16.msra.mxu0 %v4517_v5  ;;  %3461 = vmatpush3.bf16.msra.mxu1 %v4520_v6 }
 0x639   :  { %3442 = vmatprep.subr.bf16.mxu0 %v4896_v38  ;;  %3462 = vmatprep.subr.bf16.mxu1 %v4896_v38 }
 0x63c   :  { %3443 = vmatpush3.bf16.msra.mxu0 %v4525_v7  ;;  %3463 = vmatpush3.bf16.msra.mxu1 %v4528_v8 }
 0x63d   :  { %3468 = vmatprep.subr.bf16.mxu0 %v4896_v38  ;;  %3488 = vmatprep.subr.bf16.mxu1 %v4896_v38 }
 0x6d2   :  { %v2007_v23 = vpop.f32.mrb[60].mxu0  ;;  %v2049_v13 = vpop.f32.mrb[60].mxu1 }
 0x6d3   :  { %v2013_v29 = vadd.f32 %v2007_v23, %v4907_v15  ;;  %v2055_v33 = vadd.f32 %v2049_v13, %v4908_v1  ;;  %v3366_v16 = vpop.f32.mrb[61].mxu0  ;;  %v3386_v10 = vpop.f32.mrb[61].mxu1 }
 0x6d4   :  { %v2010_v30 = vpop.f32.mrb[62].mxu0  ;;  %v2052_v27 = vpop.f32.mrb[62].mxu1 }
 0x6d5   :  { %v3367_v24 = vpop.f32.mrb[63].mxu0  ;;  %v3387_v19 = vpop.f32.mrb[63].mxu1  ;;  %v2144_v28 = vmul.f32 0.5, %v2055_v33  ;;  %v2140_v25 = vmul.f32 0.5, %v2013_v29 }
 0x6d7   :  { %3732 = vtanh.f32 %v2144_v28 }
 0x6d8   :  { %3734 = vtanh.f32 %v2140_v25 }
 0x6e1   :  { %v3733_v51 = vpop.eup %3732 }
 0x6e2   :  { %v3735_v11 = vpop.eup %3734  ;;  %v2146_v14 = vmul.f32 0.5, %v3733_v51 }
 0x6e3   :  { %v2142_v13 = vmul.f32 0.5, %v3735_v11 }
 0x6e4   :  { %v2147_v15 = vadd.f32 0.5, %v2146_v14 }
 0x6e5   :  { %v2143_v29 = vadd.f32 0.5, %v2142_v13 }
 0x6e6   :  { %v2153_v33 = vmul.f32 %v2147_v15, %v4650_v55  ;;  %v4913_v55 = vld [vmem:[#allocation26_spill] sm:$0xff] }
 0x6f2   :  { %v2091_v31 = vpop.f32.mrb[64].mxu0  ;;  %v2133_v32 = vpop.f32.mrb[64].mxu1 }
 0x6f3   :  { %v2097_v48 = vadd.f32 %v2091_v31, %v4909_v47  ;;  %v2139_v50 = vadd.f32 %v2133_v32, %v4910_v49  ;;  %v3406_v52 = vpop.f32.mrb[65].mxu0  ;;  %v3426_v53 = vpop.f32.mrb[65].mxu1  ;;  %v4914_v32 = vld [vmem:[#allocation28_spill] sm:$0xff] }
 0x6f4   :  { %v2094_v54 = vpop.f32.mrb[66].mxu0  ;;  %v2136_v12 = vpop.f32.mrb[66].mxu1 }
 0x6f5   :  { %3736 = vtanh.f32 %v2097_v48  ;;  %v3407_v9 = vpop.f32.mrb[67].mxu0  ;;  %v3427_v46 = vpop.f32.mrb[67].mxu1  ;;  %v2149_v23 = vmul.f32 0.5, %v2139_v50 }
 0x6f7   :  { %3738 = vtanh.f32 %v2149_v23 }
 0x6ff   :  { %v3737_v1 = vpop.eup %3736 }
 0x700   :  { %v2154_v16 = vmul.f32 %v3737_v1, %v2143_v29 }
 0x701   :  { %v3739_v30 = vpop.eup %3738 }
 0x702   :  { %v4730_v10 = vadd.f32 %v2154_v16, %v2153_v33  ;;  %v2151_v27 = vmul.f32 0.5, %v3739_v30 }
 0x704   :  { %3740 = vtanh.f32 %v4730_v10  ;;  %v2152_v24 = vadd.f32 0.5, %v2151_v27 }
 0x70e   :  { %v3741_v19 = vpop.eup %3740 }
 0x70f   :  { %v2157_v28 = vmul.f32 %v3741_v19, %v2152_v24 }
 0x711   :  { %v2158_v25 = vpack.c.bf16 %v2157_v28, %v2157_v28 }
 0x713   :  { %3445 = vmatmul.mubr.bf16.vlgmr.msra.gmra.mrb[68].mxu0 %v2158_v25  ;;  %3465 = vmatmul.mubr.bf16.vlgmr.msra.gmra.mrb[68].mxu1 %v2158_v25 }
 0x714   :  { %3469 = vmatpush3.bf16.msra.mxu0 %v4541_v41  ;;  %3489 = vmatpush3.bf16.msra.mxu1 %v4544_v26 }
 0x715   :  { %3470 = vmatprep.subr.bf16.mxu0 %v4896_v38  ;;  %3490 = vmatprep.subr.bf16.mxu1 %v4896_v38 }
 0x716   :  { %3484 = vmatprep.mubr.msk.bf16.mxu0 %vm3873_vm0, %v4896_v38  ;;  %3504 = vmatprep.mubr.msk.bf16.mxu1 %vm3873_vm0, %v4896_v38 }
 0x718   :  { %3471 = vmatpush3.bf16.msra.mxu0 %v4553_v20  ;;  %3491 = vmatpush3.bf16.msra.mxu1 %v4556_v35 }
 0x719   :  { %3472 = vmatprep.subr.bf16.mxu0 %v4896_v38  ;;  %3492 = vmatprep.subr.bf16.mxu1 %v4896_v38 }
 0x71c   :  { %3473 = vmatpush3.bf16.msra.mxu0 %v4561_v34  ;;  %3493 = vmatpush3.bf16.msra.mxu1 %v4564_v17 }
 0x71d   :  { %3474 = vmatprep.subr.bf16.mxu0 %v4896_v38  ;;  %3494 = vmatprep.subr.bf16.mxu1 %v4896_v38 }
 0x720   :  { %3475 = vmatpush3.bf16.msra.mxu0 %v4569_v18  ;;  %3495 = vmatpush3.bf16.msra.mxu1 %v4572_v21 }
 0x721   :  { %3476 = vmatprep.subr.bf16.mxu0 %v4896_v38  ;;  %3496 = vmatprep.subr.bf16.mxu1 %v4896_v38 }
 0x724   :  { %3477 = vmatpush3.bf16.msra.mxu0 %v4577_v36  ;;  %3497 = vmatpush3.bf16.msra.mxu1 %v4580_v37 }
 0x725   :  { %3478 = vmatprep.subr.bf16.mxu0 %v4896_v38  ;;  %3498 = vmatprep.subr.bf16.mxu1 %v4896_v38 }
 0x728   :  { %3479 = vmatpush3.bf16.msra.mxu0 %v4585_v39  ;;  %3499 = vmatpush3.bf16.msra.mxu1 %v4588_v40 }
 0x729   :  { %3480 = vmatprep.subr.bf16.mxu0 %v4896_v38  ;;  %3500 = vmatprep.subr.bf16.mxu1 %v4896_v38 }
 0x72c   :  { %3481 = vmatpush3.bf16.msra.mxu0 %v4593_v42  ;;  %3501 = vmatpush3.bf16.msra.mxu1 %v4596_v43 }
 0x72d   :  { %3482 = vmatprep.subr.bf16.mxu0 %v4896_v38  ;;  %3502 = vmatprep.subr.bf16.mxu1 %v4896_v38 }
 0x730   :  { %3483 = vmatpush3.bf16.msra.mxu0 %v4601_v44  ;;  %3503 = vmatpush3.bf16.msra.mxu1 %v4604_v45 }
 0x731   :  { %3508 = vmatprep.subr.bf16.mxu0 %v4896_v38  ;;  %3528 = vmatprep.subr.bf16.mxu1 %v4896_v38 }
 0x733   :  { %3485 = vmatmul.mubr.bf16.vlgmr.msra.gmra.mrb[72].mxu0 %v2158_v25  ;;  %3505 = vmatmul.mubr.bf16.vlgmr.msra.gmra.mrb[72].mxu1 %v2158_v25 }
 0x734   :  { %3509 = vmatpush3.bf16.msra.mxu0 %v4465_v56  ;;  %3529 = vmatpush3.bf16.msra.mxu1 %v4468_v57 }
 0x735   :  { %3510 = vmatprep.subr.bf16.mxu0 %v4896_v38  ;;  %3530 = vmatprep.subr.bf16.mxu1 %v4896_v38 }
 0x736   :  { %3524 = vmatprep.mubr.msk.bf16.mxu0 %vm3873_vm0, %v4896_v38  ;;  %3544 = vmatprep.mubr.msk.bf16.mxu1 %vm3873_vm0, %v4896_v38 }
 0x738   :  { %3511 = vmatpush3.bf16.msra.mxu0 %v4477_v58  ;;  %3531 = vmatpush3.bf16.msra.mxu1 %v4480_v59  ;;  %v4911_v58 = vld [vmem:[#allocation25_spill] sm:$0xff] }
 0x739   :  { %3512 = vmatprep.subr.bf16.mxu0 %v4896_v38  ;;  %3532 = vmatprep.subr.bf16.mxu1 %v4896_v38 }
 0x73c   :  { %3513 = vmatpush3.bf16.msra.mxu0 %v4485_v60  ;;  %3533 = vmatpush3.bf16.msra.mxu1 %v4488_v61  ;;  %v4912_v60 = vld [vmem:[#allocation27_spill] sm:$0xff] }
 0x73d   :  { %3514 = vmatprep.subr.bf16.mxu0 %v4896_v38  ;;  %3534 = vmatprep.subr.bf16.mxu1 %v4896_v38 }
 0x740   :  { %3515 = vmatpush3.bf16.msra.mxu0 %v4493_v62  ;;  %3535 = vmatpush3.bf16.msra.mxu1 %v4496_v63 }
 0x741   :  { %3516 = vmatprep.subr.bf16.mxu0 %v4896_v38  ;;  %3536 = vmatprep.subr.bf16.mxu1 %v4896_v38 }
 0x744   :  { %3517 = vmatpush3.bf16.msra.mxu0 %v4501_v0  ;;  %3537 = vmatpush3.bf16.msra.mxu1 %v4504_v2 }
 0x745   :  { %3518 = vmatprep.subr.bf16.mxu0 %v4896_v38  ;;  %3538 = vmatprep.subr.bf16.mxu1 %v4896_v38 }
 0x748   :  { %3519 = vmatpush3.bf16.msra.mxu0 %v4509_v3  ;;  %3539 = vmatpush3.bf16.msra.mxu1 %v4512_v4 }
 0x749   :  { %3520 = vmatprep.subr.bf16.mxu0 %v4896_v38  ;;  %3540 = vmatprep.subr.bf16.mxu1 %v4896_v38 }
 0x74c   :  { %3521 = vmatpush3.bf16.msra.mxu0 %v4517_v5  ;;  %3541 = vmatpush3.bf16.msra.mxu1 %v4520_v6 }
 0x74d   :  { %3522 = vmatprep.subr.bf16.mxu0 %v4896_v38  ;;  %3542 = vmatprep.subr.bf16.mxu1 %v4896_v38 }
 0x750   :  { %3523 = vmatpush3.bf16.msra.mxu0 %v4525_v7  ;;  %3543 = vmatpush3.bf16.msra.mxu1 %v4528_v8 }
 0x751   :  { %3548 = vmatprep.subr.bf16.mxu0 %v4896_v38  ;;  %3568 = vmatprep.subr.bf16.mxu1 %v4896_v38 }
 0x7e6   :  { %v2194_v56 = vpop.f32.mrb[68].mxu0  ;;  %v2236_v57 = vpop.f32.mrb[68].mxu1 }
 0x7e7   :  { %v2200_v59 = vadd.f32 %v2194_v56, %v4911_v58  ;;  %v2242_v61 = vadd.f32 %v2236_v57, %v4912_v60  ;;  %v3446_v62 = vpop.f32.mrb[69].mxu0  ;;  %v3466_v63 = vpop.f32.mrb[69].mxu1 }
 0x7e8   :  { %v2197_v0 = vpop.f32.mrb[70].mxu0  ;;  %v2239_v2 = vpop.f32.mrb[70].mxu1 }
 0x7e9   :  { %v3447_v3 = vpop.f32.mrb[71].mxu0  ;;  %v3467_v4 = vpop.f32.mrb[71].mxu1  ;;  %v2331_v5 = vmul.f32 0.5, %v2242_v61  ;;  %v2327_v6 = vmul.f32 0.5, %v2200_v59 }
 0x7eb   :  { %3742 = vtanh.f32 %v2331_v5 }
 0x7ec   :  { %3744 = vtanh.f32 %v2327_v6 }
 0x7f5   :  { %v3743_v53 = vpop.eup %3742 }
 0x7f6   :  { %v3745_v51 = vpop.eup %3744  ;;  %v2333_v9 = vmul.f32 0.5, %v3743_v53 }
 0x7f7   :  { %v2329_v11 = vmul.f32 0.5, %v3745_v51 }
 0x7f8   :  { %v2334_v14 = vadd.f32 0.5, %v2333_v9 }
 0x7f9   :  { %v2330_v23 = vadd.f32 0.5, %v2329_v11 }
 0x7fa   :  { %v2340_v15 = vmul.f32 %v2334_v14, %v4730_v10  ;;  %v4917_v10 = vld [vmem:[#allocation31_spill] sm:$0xff] }
 0x806   :  { %v2278_v7 = vpop.f32.mrb[72].mxu0  ;;  %v2320_v8 = vpop.f32.mrb[72].mxu1 }
 0x807   :  { %v2284_v31 = vadd.f32 %v2278_v7, %v4913_v55  ;;  %v2326_v47 = vadd.f32 %v2320_v8, %v4914_v32  ;;  %v3486_v48 = vpop.f32.mrb[73].mxu0  ;;  %v3506_v49 = vpop.f32.mrb[73].mxu1 }
 0x808   :  { %v2281_v50 = vpop.f32.mrb[74].mxu0  ;;  %v2323_v52 = vpop.f32.mrb[74].mxu1 }
 0x809   :  { %3746 = vtanh.f32 %v2284_v31  ;;  %v3487_v54 = vpop.f32.mrb[75].mxu0  ;;  %v3507_v12 = vpop.f32.mrb[75].mxu1  ;;  %v2336_v46 = vmul.f32 0.5, %v2326_v47  ;;  %v2658_v47 = vld [vmem:[%s4862_s4] ss:$0 sm:$0xff] }
 0x80a   :  { %v2659_v50 = vld [vmem:[#allocation3] ss:$0 sm:$0xff] }
 0x80b   :  { %3748 = vtanh.f32 %v2336_v46 }
 0x813   :  { %v3747_v13 = vpop.eup %3746 }
 0x814   :  { %v2341_v29 = vmul.f32 %v3747_v13, %v2330_v23 }
 0x815   :  { %v3749_v33 = vpop.eup %3748 }
 0x816   :  { %v4810_v1 = vadd.f32 %v2341_v29, %v2340_v15  ;;  %v2338_v16 = vmul.f32 0.5, %v3749_v33 }
 0x818   :  { %3750 = vtanh.f32 %v4810_v1  ;;  %v2339_v30 = vadd.f32 0.5, %v2338_v16 }
 0x822   :  { %v3751_v27 = vpop.eup %3750 }
 0x823   :  { %v2344_v24 = vmul.f32 %v3751_v27, %v2339_v30 }
 0x825   :  { %v2345_v19 = vpack.c.bf16 %v2344_v24, %v2344_v24 }
 0x827   :  { %3525 = vmatmul.mubr.bf16.vlgmr.msra.gmra.mrb[76].mxu0 %v2345_v19  ;;  %3545 = vmatmul.mubr.bf16.vlgmr.msra.gmra.mrb[76].mxu1 %v2345_v19 }
 0x828   :  { %3549 = vmatpush3.bf16.msra.mxu0 %v4541_v41  ;;  %3569 = vmatpush3.bf16.msra.mxu1 %v4544_v26 }
 0x829   :  { %3550 = vmatprep.subr.bf16.mxu0 %v4896_v38  ;;  %3570 = vmatprep.subr.bf16.mxu1 %v4896_v38 }
 0x82a   :  { %3564 = vmatprep.mubr.msk.bf16.mxu0 %vm3873_vm0, %v4896_v38  ;;  %3584 = vmatprep.mubr.msk.bf16.mxu1 %vm3873_vm0, %v4896_v38 }
 0x82c   :  { %3551 = vmatpush3.bf16.msra.mxu0 %v4553_v20  ;;  %3571 = vmatpush3.bf16.msra.mxu1 %v4556_v35  ;;  %v4915_v35 = vld [vmem:[#allocation30_spill] sm:$0xff] }
 0x82d   :  { %3552 = vmatprep.subr.bf16.mxu0 %v4896_v38  ;;  %3572 = vmatprep.subr.bf16.mxu1 %v4896_v38 }
 0x830   :  { %3553 = vmatpush3.bf16.msra.mxu0 %v4561_v34  ;;  %3573 = vmatpush3.bf16.msra.mxu1 %v4564_v17 }
 0x831   :  { %3554 = vmatprep.subr.bf16.mxu0 %v4896_v38  ;;  %3574 = vmatprep.subr.bf16.mxu1 %v4896_v38 }
 0x834   :  { %3555 = vmatpush3.bf16.msra.mxu0 %v4569_v18  ;;  %3575 = vmatpush3.bf16.msra.mxu1 %v4572_v21 }
 0x835   :  { %3556 = vmatprep.subr.bf16.mxu0 %v4896_v38  ;;  %3576 = vmatprep.subr.bf16.mxu1 %v4896_v38 }
 0x838   :  { %3557 = vmatpush3.bf16.msra.mxu0 %v4577_v36  ;;  %3577 = vmatpush3.bf16.msra.mxu1 %v4580_v37 }
 0x839   :  { %3558 = vmatprep.subr.bf16.mxu0 %v4896_v38  ;;  %3578 = vmatprep.subr.bf16.mxu1 %v4896_v38 }
 0x83c   :  { %3559 = vmatpush3.bf16.msra.mxu0 %v4585_v39  ;;  %3579 = vmatpush3.bf16.msra.mxu1 %v4588_v40 }
 0x83d   :  { %3560 = vmatprep.subr.bf16.mxu0 %v4896_v38  ;;  %3580 = vmatprep.subr.bf16.mxu1 %v4896_v38 }
 0x840   :  { %3561 = vmatpush3.bf16.msra.mxu0 %v4593_v42  ;;  %3581 = vmatpush3.bf16.msra.mxu1 %v4596_v43 }
 0x841   :  { %3562 = vmatprep.subr.bf16.mxu0 %v4896_v38  ;;  %3582 = vmatprep.subr.bf16.mxu1 %v4896_v38 }
 0x844   :  { %3563 = vmatpush3.bf16.msra.mxu0 %v4601_v44  ;;  %3583 = vmatpush3.bf16.msra.mxu1 %v4604_v45  ;;  %v4916_v44 = vld [vmem:[#allocation29_spill] sm:$0xff] }
 0x847   :  { %3565 = vmatmul.mubr.bf16.vlgmr.msra.gmra.mrb[80].mxu0 %v2345_v19  ;;  %3585 = vmatmul.mubr.bf16.vlgmr.msra.gmra.mrb[80].mxu1 %v2345_v19 }
 0x8fa   :  { %v2381_v41 = vpop.f32.mrb[76].mxu0  ;;  %v2423_v26 = vpop.f32.mrb[76].mxu1 }
 0x8fb   :  { %v2387_v20 = vadd.f32 %v2381_v41, %v4246_v22  ;;  %v2429_v34 = vadd.f32 %v2423_v26, %v4915_v35  ;;  %v3526_v17 = vpop.f32.mrb[77].mxu0  ;;  %v3546_v18 = vpop.f32.mrb[77].mxu1 }
 0x8fc   :  { %v2384_v21 = vpop.f32.mrb[78].mxu0  ;;  %v2426_v36 = vpop.f32.mrb[78].mxu1 }
 0x8fd   :  { %v3527_v37 = vpop.f32.mrb[79].mxu0  ;;  %v3547_v39 = vpop.f32.mrb[79].mxu1  ;;  %v2518_v40 = vmul.f32 0.5, %v2429_v34  ;;  %v2514_v38 = vmul.f32 0.5, %v2387_v20 }
 0x8ff   :  { %3752 = vtanh.f32 %v2518_v40 }
 0x900   :  { %3754 = vtanh.f32 %v2514_v38 }
 0x909   :  { %v3753_v58 = vpop.eup %3752 }
 0x90a   :  { %v3755_v61 = vpop.eup %3754  ;;  %v2520_v62 = vmul.f32 0.5, %v3753_v58 }
 0x90b   :  { %v2516_v0 = vmul.f32 0.5, %v3755_v61 }
 0x90c   :  { %v2521_v2 = vadd.f32 0.5, %v2520_v62 }
 0x90d   :  { %v2517_v3 = vadd.f32 0.5, %v2516_v0 }
 0x90e   :  { %v2527_v5 = vmul.f32 %v2521_v2, %v4810_v1 }
 0x91a   :  { %v2465_v42 = vpop.f32.mrb[80].mxu0  ;;  %v2507_v43 = vpop.f32.mrb[80].mxu1 }
 0x91b   :  { %v2471_v45 = vadd.f32 %v2465_v42, %v4916_v44  ;;  %v2513_v28 = vadd.f32 %v2507_v43, %v4917_v10  ;;  %v3566_v25 = vpop.f32.mrb[81].mxu0  ;;  %v3586_v22 = vpop.f32.mrb[81].mxu1 }
 0x91c   :  { %v2468_v56 = vpop.f32.mrb[82].mxu0  ;;  %v2510_v57 = vpop.f32.mrb[82].mxu1 }
 0x91d   :  { %3756 = vtanh.f32 %v2471_v45  ;;  %v3567_v59 = vpop.f32.mrb[83].mxu0  ;;  %v3587_v60 = vpop.f32.mrb[83].mxu1  ;;  %v2523_v63 = vmul.f32 0.5, %v2513_v28 }
 0x91f   :  { %3758 = vtanh.f32 %v2523_v63 }
 0x927   :  { %v3757_v4 = vpop.eup %3756 }
 0x928   :  { %v2528_v6 = vmul.f32 %v3757_v4, %v2517_v3 }
 0x929   :  { %v3759_v8 = vpop.eup %3758 }
 0x92a   :  { %v2529_v7 = vadd.f32 %v2528_v6, %v2527_v5  ;;  %v2525_v55 = vmul.f32 0.5, %v3759_v8 }
 0x92c   :  { %3760 = vtanh.f32 %v2529_v7  ;;  %v2526_v31 = vadd.f32 0.5, %v2525_v55 }
 0x936   :  { %v3761_v32 = vpop.eup %3760 }
 0x937   :  { %v2531_v48 = vmul.f32 %v3761_v32, %v2526_v31 }
 0x939   :  { %v2539_v49 = vmul.f32 %v2658_v47, %v2531_v48 }
 0x93b   :  { %2540 = vadd.xlane.f32.xlu0 %v2539_v49 }
 0x9c8   :  { %v2541_v52 = vpop.xlane.xlu0 %2540 }
 0x9c9   :  { %v2549_v53 = vadd.f32 %v2659_v50, %v2541_v52 }
 0x9cb   :  { %2551 = vst.msk [vmem:[%s4864_s6] sm:$0xff] %vm2550_vm1, %v2549_v53 }
 0x9cc   :  { %2556 = vsyncpa [#allocation5], 1 }
 0x9cd   :  { %2557 = vsyncpa [#allocation7], 1 }

</bundles_post_ra>
